<compile_context>
chip_gen: v5e
topology: v5e:2x2
jax: 0.10.0
libtpu: 0.0.40
codegen_flags: <defaults>
</compile_context>

<pallas_src>
import functools
import math

import jax
import jax.numpy as jnp
from jax.experimental import pallas as pl
from jax.experimental.pallas import tpu as pltpu


# -----------------------------------------------------------------------------
# Fused flash-attention forward kernel (online softmax, f32 accumulation).
# -----------------------------------------------------------------------------
def _flash_mha_kernel(q_ref, k_ref, v_ref, o_ref, m_sc, l_sc, acc_sc, *, scale):
    ki = pl.program_id(2)  # KV (reduction) axis

    @pl.when(ki == 0)
    def _init():
        m_sc[...] = jnp.full(m_sc.shape, -jnp.inf, dtype=m_sc.dtype)
        l_sc[...] = jnp.zeros(l_sc.shape, dtype=l_sc.dtype)
        acc_sc[...] = jnp.zeros(acc_sc.shape, dtype=acc_sc.dtype)

    q = q_ref[0]  # (tile_q, D)
    k = k_ref[0]  # (tile_k, D)
    v = v_ref[0]  # (tile_k, D)

    # Scores on the MXU, contracting over the head dim (no explicit transpose).
    s = jax.lax.dot_general(
        q, k, (((1,), (1,)), ((), ())),
        preferred_element_type=jnp.float32) * scale            # (tile_q, tile_k)

    # Online softmax update.
    m_prev = m_sc[...]                                          # (tile_q, 1)
    m_new = jnp.maximum(m_prev, s.max(axis=-1, keepdims=True))
    alpha = jnp.exp(m_prev - m_new)
    p = jnp.exp(s - m_new)                                      # (tile_q, tile_k)

    l_sc[...] = alpha * l_sc[...] + p.sum(axis=-1, keepdims=True)
    acc_sc[...] = alpha * acc_sc[...] + jnp.dot(
        p.astype(v.dtype), v, preferred_element_type=jnp.float32)
    m_sc[...] = m_new

    @pl.when(ki == pl.num_programs(2) - 1)
    def _finalize():
        inv_l = pl.reciprocal(l_sc[...], approx=True)           # EUP slot, ~free
        o_ref[0] = (acc_sc[...] * inv_l).astype(o_ref.dtype)


def flash_mha(q, k, v, *, tile_q=128, tile_k=128):
    """Fused multi-head attention: softmax(QK^T / sqrt(D)) V via Pallas."""
    B, H, S, D = q.shape
    assert k.shape == (B, H, S, D) and v.shape == (B, H, S, D)
    assert S % tile_q == 0 and S % tile_k == 0, "seq must divide tile sizes"
    assert D % 128 == 0, "head_dim must be lane-dense (multiple of 128)"

    bh = B * H
    qf = q.reshape(bh, S, D)
    kf = k.reshape(bh, S, D)
    vf = v.reshape(bh, S, D)
    scale = 1.0 / math.sqrt(D)

    kernel = functools.partial(_flash_mha_kernel, scale=scale)
    out = pl.pallas_call(
        kernel,
        out_shape=jax.ShapeDtypeStruct((bh, S, D), q.dtype),
        grid=(bh, S // tile_q, S // tile_k),
        in_specs=[
            pl.BlockSpec((1, tile_q, D), lambda b, qi, ki: (b, qi, 0)),
            pl.BlockSpec((1, tile_k, D), lambda b, qi, ki: (b, ki, 0)),
            pl.BlockSpec((1, tile_k, D), lambda b, qi, ki: (b, ki, 0)),
        ],
        out_specs=pl.BlockSpec((1, tile_q, D), lambda b, qi, ki: (b, qi, 0)),
        scratch_shapes=[
            pltpu.VMEM((tile_q, 1), jnp.float32),   # running max m
            pltpu.VMEM((tile_q, 1), jnp.float32),   # running denom l
            pltpu.VMEM((tile_q, D), jnp.float32),   # f32 output accumulator
        ],
        compiler_params=pltpu.CompilerParams(
            dimension_semantics=("parallel", "parallel", "arbitrary")),
    )(qf, kf, vf)
    return out.reshape(B, H, S, D)


def _mha_reference(q, k, v):
    """Pure-JAX reference for correctness checking."""
    scale = 1.0 / math.sqrt(q.shape[-1])
    s = jnp.einsum("bhqd,bhkd->bhqk", q, k) * scale
    p = jax.nn.softmax(s, axis=-1)
    return jnp.einsum("bhqk,bhkd->bhqd", p, v)


# -----------------------------------------------------------------------------
# Faithful port of the (stub) PyTorch module.
# -----------------------------------------------------------------------------
class MultiHeadAttention:
    """JAX/Pallas port of the stub PyTorch MultiHeadAttention module.

    The reference module defines no parameters and its forward() is `pass`,
    so forward() here returns None, reproducing the PyTorch semantics exactly.
    """

    def __init__(self):
        # Reference __init__ declares no weights.
        pass

    def forward(self):
        # Matches `def forward(self): pass` in the PyTorch module.
        return None

    def __call__(self):
        return self.forward()


if __name__ == "__main__":
    # Deterministic small inputs exercising the fused attention kernel.
    key = jax.random.PRNGKey(0)
    kq, kk, kv = jax.random.split(key, 3)
    B, H, S, D = 2, 2, 256, 128
    q = jax.random.normal(kq, (B, H, S, D), dtype=jnp.float32)
    k = jax.random.normal(kk, (B, H, S, D), dtype=jnp.float32)
    v = jax.random.normal(kv, (B, H, S, D), dtype=jnp.float32)

    out = flash_mha(q, k, v)
    jax.block_until_ready(out)

    ref = _mha_reference(q, k, v)
    assert out.shape == ref.shape and out.dtype == ref.dtype
    assert bool(jnp.allclose(out, ref, atol=2e-3, rtol=2e-3))

    # Exercise the module exactly as PyTorch would: forward() -> None.
    mha = MultiHeadAttention()
    assert mha() is None

    print("KERNEL_OK")
</pallas_src>

<mosaic_0001>
module attributes {stable_mosaic.version = 11 : i64} {
  func.func @_flash_mha_kernel(%arg0: i32, %arg1: i32, %arg2: i32, %arg3: memref<1x128x128xf32, #tpu.memory_space<vmem>>, %arg4: memref<1x128x128xf32, #tpu.memory_space<vmem>>, %arg5: memref<1x128x128xf32, #tpu.memory_space<vmem>>, %arg6: memref<1x128x128xf32, #tpu.memory_space<vmem>>, %arg7: memref<128x1xf32, #tpu.memory_space<vmem>>, %arg8: memref<128x1xf32, #tpu.memory_space<vmem>>, %arg9: memref<128x128xf32, #tpu.memory_space<vmem>>) attributes {dimension_semantics = [#tpu.dimension_semantics<parallel>, #tpu.dimension_semantics<parallel>, #tpu.dimension_semantics<arbitrary>], iteration_bounds = array<i64: 4, 2, 2>, scalar_prefetch = 0 : i64, scratch_operands = 3 : i64, tpu.core_type = #tpu.core_type<tc>, window_params = [{transform_indices = @transform_0, window_bounds = array<i64: 1, 128, 128>}, {transform_indices = @transform_1, window_bounds = array<i64: 1, 128, 128>}, {transform_indices = @transform_2, window_bounds = array<i64: 1, 128, 128>}, {transform_indices = @transform_3, window_bounds = array<i64: 1, 128, 128>}]} {
    %c0_i32 = arith.constant 0 : i32
    %0 = arith.cmpi eq, %arg2, %c0_i32 : i32
    %1 = arith.extui %0 : i1 to i32
    %c0_i32_0 = arith.constant 0 : i32
    %2 = arith.cmpi ne, %1, %c0_i32_0 : i32
    scf.if %2 {
      %cst_26 = arith.constant 0xFF800000 : f32
      %37 = vector.broadcast %cst_26 : f32 to vector<128x1xf32>
      %c0_27 = arith.constant 0 : index
      %c0_28 = arith.constant 0 : index
      %38 = vector.load %arg7[%c0_27, %c0_28] : memref<128x1xf32, #tpu.memory_space<vmem>>, vector<128x1xf32>
      tpu.vector_store %arg7[%c0_27, %c0_28], %37 {strides = array<i32>} : memref<128x1xf32, #tpu.memory_space<vmem>>, vector<128x1xf32>,
      %cst_29 = arith.constant 0.000000e+00 : f32
      %39 = vector.broadcast %cst_29 : f32 to vector<128x1xf32>
      %c0_30 = arith.constant 0 : index
      %c0_31 = arith.constant 0 : index
      %40 = vector.load %arg8[%c0_30, %c0_31] : memref<128x1xf32, #tpu.memory_space<vmem>>, vector<128x1xf32>
      tpu.vector_store %arg8[%c0_30, %c0_31], %39 {strides = array<i32>} : memref<128x1xf32, #tpu.memory_space<vmem>>, vector<128x1xf32>,
      %cst_32 = arith.constant 0.000000e+00 : f32
      %41 = vector.broadcast %cst_32 : f32 to vector<128x128xf32>
      %c0_33 = arith.constant 0 : index
      %c0_34 = arith.constant 0 : index
      %42 = vector.load %arg9[%c0_33, %c0_34] : memref<128x128xf32, #tpu.memory_space<vmem>>, vector<128x128xf32>
      tpu.vector_store %arg9[%c0_33, %c0_34], %41 {strides = array<i32>} : memref<128x128xf32, #tpu.memory_space<vmem>>, vector<128x128xf32>,
    } else {
    }
    %c0 = arith.constant 0 : index
    %c0_1 = arith.constant 0 : index
    %c0_2 = arith.constant 0 : index
    %3 = vector.load %arg3[%c0, %c0_1, %c0_2] : memref<1x128x128xf32, #tpu.memory_space<vmem>>, vector<1x128x128xf32>
    %4 = vector.shape_cast %3 : vector<1x128x128xf32> to vector<128x128xf32>
    %c0_3 = arith.constant 0 : index
    %c0_4 = arith.constant 0 : index
    %c0_5 = arith.constant 0 : index
    %5 = vector.load %arg4[%c0_3, %c0_4, %c0_5] : memref<1x128x128xf32, #tpu.memory_space<vmem>>, vector<1x128x128xf32>
    %6 = vector.shape_cast %5 : vector<1x128x128xf32> to vector<128x128xf32>
    %c0_6 = arith.constant 0 : index
    %c0_7 = arith.constant 0 : index
    %c0_8 = arith.constant 0 : index
    %7 = vector.load %arg5[%c0_6, %c0_7, %c0_8] : memref<1x128x128xf32, #tpu.memory_space<vmem>>, vector<1x128x128xf32>
    %8 = vector.shape_cast %7 : vector<1x128x128xf32> to vector<128x128xf32>
    %cst = arith.constant dense<0.000000e+00> : vector<128x128xf32>
    %9 = tpu.matmul %4, %6, %cst {dimension_numbers = #tpu.dot_dimension_numbers<[1], [1], [0], [0], [0, 0, 1, 0], [], []>} : vector<128x128xf32>, vector<128x128xf32>, vector<128x128xf32> -> vector<128x128xf32>
    %cst_9 = arith.constant 0.0883883461 : f32
    %10 = vector.broadcast %cst_9 : f32 to vector<128x128xf32>
    %11 = arith.mulf %9, %10 : vector<128x128xf32>
    %c0_10 = arith.constant 0 : index
    %c0_11 = arith.constant 0 : index
    %12 = vector.load %arg7[%c0_10, %c0_11] : memref<128x1xf32, #tpu.memory_space<vmem>>, vector<128x1xf32>
    %cst_12 = arith.constant dense<0xFF800000> : vector<128xf32>
    %13 = vector.multi_reduction <maximumf>, %11, %cst_12 [1] : vector<128x128xf32> to vector<128xf32>
    %14 = vector.shape_cast %13 : vector<128xf32> to vector<128x1xf32>
    %15 = arith.maximumf %12, %14 : vector<128x1xf32>
    %16 = arith.subf %12, %15 : vector<128x1xf32>
    %17 = math.exp %16 : vector<128x1xf32>
    %18 = vector.broadcast %15 : vector<128x1xf32> to vector<128x128xf32>
    %19 = arith.subf %11, %18 : vector<128x128xf32>
    %20 = math.exp %19 : vector<128x128xf32>
    %c0_13 = arith.constant 0 : index
    %c0_14 = arith.constant 0 : index
    %21 = vector.load %arg8[%c0_13, %c0_14] : memref<128x1xf32, #tpu.memory_space<vmem>>, vector<128x1xf32>
    %22 = arith.mulf %17, %21 : vector<128x1xf32>
    %cst_15 = arith.constant dense<0.000000e+00> : vector<128xf32>
    %23 = vector.multi_reduction <add>, %20, %cst_15 [1] : vector<128x128xf32> to vector<128xf32>
    %24 = vector.shape_cast %23 : vector<128xf32> to vector<128x1xf32>
    %25 = arith.addf %22, %24 : vector<128x1xf32>
    %c0_16 = arith.constant 0 : index
    %c0_17 = arith.constant 0 : index
    %26 = vector.load %arg8[%c0_16, %c0_17] : memref<128x1xf32, #tpu.memory_space<vmem>>, vector<128x1xf32>
    tpu.vector_store %arg8[%c0_16, %c0_17], %25 {strides = array<i32>} : memref<128x1xf32, #tpu.memory_space<vmem>>, vector<128x1xf32>,
    %c0_18 = arith.constant 0 : index
    %c0_19 = arith.constant 0 : index
    %27 = vector.load %arg9[%c0_18, %c0_19] : memref<128x128xf32, #tpu.memory_space<vmem>>, vector<128x128xf32>
    %28 = vector.broadcast %17 : vector<128x1xf32> to vector<128x128xf32>
    %29 = arith.mulf %28, %27 : vector<128x128xf32>
    %cst_20 = arith.constant dense<0.000000e+00> : vector<128x128xf32>
    %30 = tpu.matmul %20, %8, %cst_20 {dimension_numbers = #tpu.dot_dimension_numbers<[1], [0], [0], [1], [0, 0, 1, 1], [], []>} : vector<128x128xf32>, vector<128x128xf32>, vector<128x128xf32> -> vector<128x128xf32>
    %31 = arith.addf %29, %30 : vector<128x128xf32>
    %c0_21 = arith.constant 0 : index
    %c0_22 = arith.constant 0 : index
    %32 = vector.load %arg9[%c0_21, %c0_22] : memref<128x128xf32, #tpu.memory_space<vmem>>, vector<128x128xf32>
    tpu.vector_store %arg9[%c0_21, %c0_22], %31 {strides = array<i32>} : memref<128x128xf32, #tpu.memory_space<vmem>>, vector<128x128xf32>,
    %c0_23 = arith.constant 0 : index
    %c0_24 = arith.constant 0 : index
    %33 = vector.load %arg7[%c0_23, %c0_24] : memref<128x1xf32, #tpu.memory_space<vmem>>, vector<128x1xf32>
    tpu.vector_store %arg7[%c0_23, %c0_24], %15 {strides = array<i32>} : memref<128x1xf32, #tpu.memory_space<vmem>>, vector<128x1xf32>,
    %c1_i32 = arith.constant 1 : i32
    %34 = arith.cmpi eq, %arg2, %c1_i32 : i32
    %35 = arith.extui %34 : i1 to i32
    %c0_i32_25 = arith.constant 0 : i32
    %36 = arith.cmpi ne, %35, %c0_i32_25 : i32
    scf.if %36 {
      %c0_26 = arith.constant 0 : index
      %c0_27 = arith.constant 0 : index
      %37 = vector.load %arg8[%c0_26, %c0_27] : memref<128x1xf32, #tpu.memory_space<vmem>>, vector<128x1xf32>
      %38 = tpu.reciprocal %37 {approx = true} : vector<128x1xf32> -> vector<128x1xf32>
      %c0_28 = arith.constant 0 : index
      %c0_29 = arith.constant 0 : index
      %39 = vector.load %arg9[%c0_28, %c0_29] : memref<128x128xf32, #tpu.memory_space<vmem>>, vector<128x128xf32>
      %40 = vector.broadcast %38 : vector<128x1xf32> to vector<128x128xf32>
      %41 = arith.mulf %39, %40 : vector<128x128xf32>
      %c0_30 = arith.constant 0 : index
      %c0_31 = arith.constant 0 : index
      %c0_32 = arith.constant 0 : index
      %42 = vector.load %arg6[%c0_30, %c0_31, %c0_32] : memref<1x128x128xf32, #tpu.memory_space<vmem>>, vector<1x128x128xf32>
      %43 = vector.shape_cast %42 : vector<1x128x128xf32> to vector<128x128xf32>
      %44 = vector.shape_cast %41 : vector<128x128xf32> to vector<1x128x128xf32>
      tpu.vector_store %arg6[%c0_30, %c0_31, %c0_32], %44 {strides = array<i32>} : memref<1x128x128xf32, #tpu.memory_space<vmem>>, vector<1x128x128xf32>,
    } else {
    }
    return
  }
  func.func @transform_0(%arg0: i32, %arg1: i32, %arg2: i32) -> (i32, i32, i32) {
    %c0_i32 = arith.constant 0 : i32
    %c0_i32_0 = arith.constant 0 : i32
    return %arg0, %arg1, %c0_i32 : i32, i32, i32
  }
  func.func @transform_1(%arg0: i32, %arg1: i32, %arg2: i32) -> (i32, i32, i32) {
    %c0_i32 = arith.constant 0 : i32
    %c0_i32_0 = arith.constant 0 : i32
    return %arg0, %arg2, %c0_i32 : i32, i32, i32
  }
  func.func @transform_2(%arg0: i32, %arg1: i32, %arg2: i32) -> (i32, i32, i32) {
    %c0_i32 = arith.constant 0 : i32
    %c0_i32_0 = arith.constant 0 : i32
    return %arg0, %arg2, %c0_i32 : i32, i32, i32
  }
  func.func @transform_3(%arg0: i32, %arg1: i32, %arg2: i32) -> (i32, i32, i32) {
    %c0_i32 = arith.constant 0 : i32
    %c0_i32_0 = arith.constant 0 : i32
    return %arg0, %arg1, %c0_i32 : i32, i32, i32
  }
}

</mosaic_0001>

<bundles_post_ra>
// kernel: tpu_custom_call.1
= control target key start
LH: loop header
LB: loop body
LE: loop exit
PB: predicated region body
PF: predicated region fallthrough
CT: control target
= control target key end

     0   :  { %s2701_s0 = inlined_call_operand.hbm [shape: f32[4,256,128], index: 0, kind: input, shape index: {}]   ;;  %s2702_s1 = inlined_call_operand.hbm [shape: f32[4,256,128], index: 1, kind: input, shape index: {}]   ;;  %s2703_s2 = inlined_call_operand.hbm [shape: f32[4,256,128], index: 2, kind: input, shape index: {}]   ;;  %s2704_s3 = inlined_call_operand.hbm [shape: f32[4,256,128], index: 3, kind: output, shape index: {}]  }
   0x1   :  { %2726 = sst [smem:[#allocation30_spill]] %s2702_s1 }
   0x2   :  { %2727 = sst [smem:[#allocation31_spill]] %s2703_s2 }
   0x3   :  { %2728 = sst [smem:[#allocation32_spill]] %s2704_s3 }
   0x4   :  { %8 = vsyncpa [#allocation6], 0 }
   0x5   :  { %10 = vsyncpa [#allocation6 + $0x1], 0 }
   0x6   :  { %11 = vsyncpa [#allocation9], 0 }
   0x7   :  { %13 = vsyncpa [#allocation9 + $0x1], 0 }
   0x8   :  { %14 = vsyncpa [#allocation7], 0 }
   0x9   :  { %16 = vsyncpa [#allocation7 + $0x1], 0  ;;  %s1973_s12 = smov 0   ;;  %s1975_s13 = smov 0  }
   0xa   :  { %s1977_s14 = smov 0   ;;  %s1979_s15 = smov 0  }
   0xb   :  { %s1981_s16 = smov 0   ;;  %s1983_s17 = smov 0  }
   0xc   :  { %s1985_s18 = smov 0   ;;  %s1987_s19 = smov 0  }
   0xd   :  { %s1989_s20 = smov 0   ;;  %s1991_s21 = smov 0  }
   0xe   :  { %s1993_s22 = smov 0   ;;  %s1995_s23 = smov 0  }
   0xf   :  { %s1997_s24 = smov 0  }
  0x10 LB: > { %2729 = sst [smem:[#allocation15_spill]] %s1899_s13  ;;  %s2037_s25 = sadd.s32 4294967295, %s1943_s24   ;;  %s1943_s24 = sphi %s1997_s24, %s22_s24   ;;  %s1939_s23 = sphi %s1995_s23, %s2790_s23   ;;  %s1935_s22 = sphi %s1993_s22, %s2780_s22   ;;  %s1931_s21 = sphi %s1991_s21, %s2789_s21   ;;  %s1927_s20 = sphi %s1989_s20, %s2788_s20   ;;  %s1923_s19 = sphi %s1987_s19, %s2779_s19   ;;  %s1919_s18 = sphi %s1985_s18, %s2787_s18   ;;  %s1915_s17 = sphi %s1983_s17, %s2786_s17   ;;  %s1911_s16 = sphi %s1981_s16, %s2785_s16   ;;  %s1907_s15 = sphi %s1979_s15, %s2784_s15   ;;  %s1903_s14 = sphi %s1977_s14, %s2783_s14   ;;  %s1899_s13 = sphi %s1975_s13, %s2782_s13   ;;  %s1895_s12 = sphi %s1973_s12, %s2776_s12  }
  0x11   : > { %2730 = sst [smem:[#allocation16_spill]] %s1907_s15  ;;  %s34_s26 = sadd.s32 1, %s1931_s21 }
  0x12   : > { %2731 = sst [smem:[#allocation17_spill]] %s1911_s16  ;;  %p2040_p0 = scmp.ge.s32.totalorder %s34_s26, 2 }
  0x13   : > { %2732 = sst [smem:[#allocation18_spill]] %s1919_s18  ;;  %p58_p1 = scmp.eq.s32.totalorder %s1943_s24, 0 }
  0x14   : > { %2733 = sst [smem:[#allocation19_spill]] %s1923_s19  ;;  %p64_p2 = scmp.eq.s32.totalorder %s2037_s25, 0 }
  0x15   : > { %2734 = sst [smem:[#allocation20_spill]] %s1927_s20  ;;  %s2792_s26 = smov (%p2040_p0, %s34_s26), 0 }
  0x16   : > { %2735 = sst [smem:[#allocation21_spill]] %s1935_s22  ;;  %p85_p3 = scmp.ne.s32.totalorder %s1903_s14, %s1899_s13 }
  0x17   : > { %2736 = sst [smem:[#allocation22_spill]] %s2037_s25  ;;  %p91_p4 = scmp.ne.s32.totalorder %s1899_s13, %s1895_s12 }
  0x18   : > { %p2057_p5 = por %p85_p3, %p58_p1  ;;  %p1495_p7 = scmp.lt.s32.totalorder %s1943_s24, 16 }
  0x19   : > { %p2063_p6 = por %p91_p4, %p64_p2  ;;  %s2710_s5 = sshll.u32 %s1939_s23, 5 }
  0x1a   : > { %s195_s6 = sand.u32 1, %s1943_s24   ;;  %s197_s7 = sand.u32 1, %s1903_s14  }
  0x1b   : > { %s2739_s4 = scalar_select %p2063_p6, 1, 0 }
  0x1c   : > { %s1388_s8 = sshll.u32 %s197_s7, 7  ;;  %s1389_s9 = sshll.u32 %s1931_s21, 4 }
  0x1d   : > { %2740 = sst [smem:[#allocation23_spill]] %s2739_s4  ;;  %s204_s10 = sadd.s32 %s1389_s9, %s2710_s5 }
  0x1e   : > { %s1391_s11 = sshll.u32 %s204_s10, 3  ;;  %s199_s12 = scalar_lea.vmem [#allocation8], %s1388_s8 }
  0x1f   : > { %s209_s29 = sshll.u32 %s199_s12, 4  ;;  %s2741_s1 = sld [smem:[#allocation30_spill]]  ;;  %s210_s29 = int_to_ptr.vmem [resolvable:$true] %s209_s29 }
  0x20   : > { %p2081_p8 = pnand %p1495_p7, %p2057_p5  ;;  %s2743_s2 = sld [smem:[#allocation31_spill]] }
  0x21   : > { %s2088_s28 = scalar_lea.sflag [#allocation9], %s195_s6  ;;  %s2708_s30 = smov 8  }
  0x22   : > { %s223_s6 = scalar_lea.vmem [#allocation10], %s1388_s8  ;;  %p1396_p9 = scmp.ge.s32.totalorder %s1943_s24, 1 }
  0x23   : > { %s2100_s9 = sshll.u32 %s223_s6, 4  ;;  %p241_p10 = scmp.lt.s32.totalorder %s1943_s24, 17  ;;  %s234_s9 = int_to_ptr.vmem [resolvable:$true] %s2100_s9 }
  0x24   : > { %p57_p12 = scmp.ne.s32.totalorder %s1915_s17, %s1911_s16  ;;  %p63_p13 = scmp.ne.s32.totalorder %s1911_s16, %s1907_s15 }
  0x25   : > { %s206_s20 = scalar_lea.hbm %s2741_s1, %s1391_s11  ;;  %p2104_p11 = pnand %p1396_p9, %p241_p10 }
  0x26   : > { %s207_s19 = sshll.u32 %s206_s20, 4  ;;  %s230_s3 = scalar_lea.hbm %s2743_s2, %s1391_s11  ;;  %s208_s19 = int_to_ptr.hbm [resolvable:$true] %s207_s19 }
  0x27   : > { %s2706_s20 = smov 128   ;;  %s231_s11 = sshll.u32 %s230_s3, 4  ;;  %s2098_s11 = int_to_ptr.hbm [resolvable:$true] %s231_s11 }
  0x28   : > { %1487 = dma.hbm_to_vmem [thread:$0]  (!%p2081_p8), %s208_s19, 2048, %s210_s29, %s2088_s28, %s2706_s20, %s2706_s20, %s2708_s30  }
  0x29   : > { %s2744_s10 = scalar_select %p2104_p11, 1, 0 }
  0x2a   : > { %s1381_s19 = sadd.s32 4294967294, %s1943_s24   ;;  %s37_s29 = sadd.s32 1, %s1935_s22 }
  0x2b   : > { %2745 = sst [smem:[#allocation24_spill]] %s2744_s10  ;;  %s50_s3 = sadd.s32 1, %s1915_s17 }
  0x2c   : > { %s2794_s29 = smov (!%p2040_p0, %s37_s29), %s1935_s22  ;;  %p145_p4 = scmp.eq.s32.totalorder %s2037_s25, 15 }
  0x2d   : > { %p39_p3 = scmp.ge.s32.totalorder %s2794_s29, 2  ;;  %p2121_p5 = por %p58_p1, %p57_p12 }
  0x2e   : > { %p2130_p9 = por %p64_p2, %p63_p13  ;;  %s2750_s27 = sadd.s32 1, %s1939_s23 }
  0x2f   : > { %s2796_s29 = smov (%p39_p3, %s2794_s29), 0  ;;  %s2798_s27 = smov (!%p39_p3, %s2750_s27), %s1939_s23 }
  0x30   : > { %s2747_s6 = scalar_select %p2130_p9, 1, 0 }
  0x31   : > { %2749 = sst [smem:[#allocation26_spill]] %s2796_s29  ;;  %s46_s20 = ssub.s32 %s1935_s22, %s2796_s29 }
  0x32   : > { %2748 = sst [smem:[#allocation25_spill]] %s2747_s6  ;;  %p2141_p0 = por %p145_p4, %p57_p12 }
  0x33   : > { %p43_p1 = scmp.ge.s32.totalorder %s2798_s27, 4  ;;  %p151_p10 = scmp.eq.s32.totalorder %s1381_s19, 15 }
  0x34   : > { %s2751_s30 = scalar_select %p2141_p0, 1, 0 }
  0x35   : > { %s171_s5 = sand.u32 1, %s1915_s17   ;;  %s1385_s12 = sshll.u32 %s1935_s22, 4 }
  0x36   : > { %2752 = sst [smem:[#allocation27_spill]] %s2751_s30  ;;  %s2800_s27 = smov (%p43_p1, %s2798_s27), 0 }
  0x37   : > { %2753 = sst [smem:[#allocation28_spill]] %s2800_s27  ;;  %p2152_p2 = por %p151_p10, %p63_p13 }
  0x38   : > { %s45_s2 = ssub.s32 %s1939_s23, %s2800_s27  ;;  %s1384_s29 = sshll.u32 %s171_s5, 7 }
  0x39   : > { %s2754_s1 = scalar_select %p2152_p2, 1, 0 }
  0x3a   : > { %s47_s18 = sor.u32 %s46_s20, %s45_s2  ;;  %s2756_s4 = ssub.s32 %s1931_s21, %s2792_s26 }
  0x3b   : > { %2755 = sst [smem:[#allocation29_spill]] %s2754_s1  ;;  %s75_s30 = sor.u32 %s2756_s4, %s45_s2 }
  0x3c   : > { %p48_p12 = scmp.eq.s32.totalorder %s47_s18, 0  ;;  %p76_p3 = scmp.eq.s32.totalorder %s75_s30, 0 }
  0x3d   : > { %s2757_s19 = sshll.u32 %s1939_s23, 5  ;;  %s2758_s13 = sadd.s32 1, %s1903_s14 }
  0x3e   : > { %s180_s22 = sadd.s32 %s2757_s19, %s1385_s12  ;;  %s175_s6 = scalar_lea.vmem [#allocation5], %s1384_s29 }
  0x3f   : > { %s2164_s15 = scalar_select %p48_p12, %s1915_s17, %s50_s3  }
  0x40   : > { %s2169_s25 = scalar_select %p76_p3, %s1903_s14, %s2758_s13  }
  0x41   : > { %s1387_s1 = sshll.u32 %s180_s22, 3  ;;  %s185_s27 = sshll.u32 %s175_s6, 4  ;;  %s186_s27 = int_to_ptr.vmem [resolvable:$true] %s185_s27 }
  0x42   : > { %s182_s20 = scalar_lea.hbm %s2701_s0, %s1387_s1  ;;  %p1482_p13 = pnand %p1495_p7, %p2121_p5 }
  0x43   : > { %s183_s2 = sshll.u32 %s182_s20, 4  ;;  %s172_s18 = scalar_lea.sflag [#allocation6], %s171_s5  ;;  %s184_s2 = int_to_ptr.hbm [resolvable:$true] %s183_s2 }
  0x44   : > { %s2759_s4 = smov 8   ;;  %s2760_s30 = smov 128  }
  0x45   : > { %1484 = dma.hbm_to_vmem [thread:$0]  (!%p1482_p13), %s184_s2, 2048, %s186_s27, %s172_s18, %s2760_s30, %s2760_s30, %s2759_s4  }
  0x46   : > { %1490 = dma.hbm_to_vmem [thread:$0]  (!%p2081_p8), %s2098_s11, 2048, %s234_s9, %s2088_s28, %s2760_s30, %s2760_s30, %s2759_s4  }
  0x47   : > { %245 = sbr.rel (%p2104_p11) target bundleno = 1025 (0x401), region = 32  ;;  %s2762_s1 = sld [smem:[#allocation17_spill]] (!%p2104_p11) }
  0x4d   : > { %s2192_s22 = sand.u32 1, %s2762_s1  }
  0x4e   : > { %s1397_s12 = sshll.u32 %s2192_s22, 7  ;;  %s248_s5 = scalar_lea.sflag [#allocation6], %s2192_s22 }
  0x4f   : > { %s2196_s10 = scalar_lea.vmem [#allocation5], %s1397_s12 }
  0x50   : > { %1882 = dma.done.wait (%p2130_p9), %s248_s5, 2048  }
  0x51   : > { %1884 = vsyncadd (%p2130_p9), %s248_s5, 4294965248  ;;  %s2764_s7 = sld [smem:[#allocation22_spill]] }
  0x52   : > { %s2765_s28 = sld [smem:[#allocation15_spill]] }
  0x57   : > { %s257_s9 = sand.u32 1, %s2764_s7  }
  0x58   : > { %s259_s29 = sand.u32 1, %s2765_s28   ;;  %s258_s8 = scalar_lea.sflag [#allocation9], %s257_s9 }
  0x59   : > { %s1398_s3 = sshll.u32 %s259_s29, 7 }
  0x5a   : > { %s2204_s6 = scalar_lea.vmem [#allocation8], %s1398_s3 }
  0x5b   : > { %1886 = dma.done.wait (%p2063_p6), %s258_s8, 4096  }
  0x5c   : > { %1888 = vsyncadd (%p2063_p6), %s258_s8, 4294963200  ;;  %s2210_s27 = scalar_lea.vmem [#allocation10], %s1398_s3  ;;  %s2212_s19 = scalar_lea.vmem [#allocation11], %s1397_s12 }
  0x5d   : > { %s2767_s20 = sld [smem:[#allocation18_spill]] }
  0x63   : > { %p1401_p7 = scmp.ne.s32.totalorder %s2767_s20, 0 }
  0x65   : > { %312 = sbr.rel (%p1401_p7) target bundleno = 155 (0x9b), region = 48 }
  0x6a   : > { %vm313_vm0 = vcmask 7168   ;;  %v1947_v0 = vmov -inf   ;;  %v1948_v1 = vmov 0.0  }
  0x6b   : > { %314 = vst.msk [vmem:[#allocation2] sm:$0xff] %vm313_vm0, %v1947_v0 }
  0x6c   : > { %315 = vst.msk [vmem:[#allocation2 + $0x8] sm:$0xff] %vm313_vm0, %v1947_v0 }
  0x6d   : > { %316 = vst.msk [vmem:[#allocation2 + $0x10] sm:$0xff] %vm313_vm0, %v1947_v0 }
  0x6e   : > { %317 = vst.msk [vmem:[#allocation2 + $0x18] sm:$0xff] %vm313_vm0, %v1947_v0 }
  0x6f   : > { %318 = vst.msk [vmem:[#allocation2 + $0x20] sm:$0xff] %vm313_vm0, %v1947_v0 }
  0x70   : > { %319 = vst.msk [vmem:[#allocation2 + $0x28] sm:$0xff] %vm313_vm0, %v1947_v0 }
  0x71   : > { %320 = vst.msk [vmem:[#allocation2 + $0x30] sm:$0xff] %vm313_vm0, %v1947_v0 }
  0x72   : > { %321 = vst.msk [vmem:[#allocation2 + $0x38] sm:$0xff] %vm313_vm0, %v1947_v0 }
  0x73   : > { %322 = vst.msk [vmem:[#allocation2 + $0x40] sm:$0xff] %vm313_vm0, %v1947_v0 }
  0x74   : > { %323 = vst.msk [vmem:[#allocation2 + $0x48] sm:$0xff] %vm313_vm0, %v1947_v0 }
  0x75   : > { %324 = vst.msk [vmem:[#allocation2 + $0x50] sm:$0xff] %vm313_vm0, %v1947_v0 }
  0x76   : > { %325 = vst.msk [vmem:[#allocation2 + $0x58] sm:$0xff] %vm313_vm0, %v1947_v0 }
  0x77   : > { %326 = vst.msk [vmem:[#allocation2 + $0x60] sm:$0xff] %vm313_vm0, %v1947_v0 }
  0x78   : > { %327 = vst.msk [vmem:[#allocation2 + $0x68] sm:$0xff] %vm313_vm0, %v1947_v0 }
  0x79   : > { %328 = vst.msk [vmem:[#allocation2 + $0x70] sm:$0xff] %vm313_vm0, %v1947_v0 }
  0x7a   : > { %329 = vst.msk [vmem:[#allocation2 + $0x78] sm:$0xff] %vm313_vm0, %v1947_v0 }
  0x7b   : > { %330 = vst.msk [vmem:[#allocation3] sm:$0xff] %vm313_vm0, %v1948_v1 }
  0x7c   : > { %331 = vst.msk [vmem:[#allocation3 + $0x8] sm:$0xff] %vm313_vm0, %v1948_v1 }
  0x7d   : > { %332 = vst.msk [vmem:[#allocation3 + $0x10] sm:$0xff] %vm313_vm0, %v1948_v1 }
  0x7e   : > { %333 = vst.msk [vmem:[#allocation3 + $0x18] sm:$0xff] %vm313_vm0, %v1948_v1 }
  0x7f   : > { %334 = vst.msk [vmem:[#allocation3 + $0x20] sm:$0xff] %vm313_vm0, %v1948_v1 }
  0x80   : > { %335 = vst.msk [vmem:[#allocation3 + $0x28] sm:$0xff] %vm313_vm0, %v1948_v1 }
  0x81   : > { %336 = vst.msk [vmem:[#allocation3 + $0x30] sm:$0xff] %vm313_vm0, %v1948_v1 }
  0x82   : > { %337 = vst.msk [vmem:[#allocation3 + $0x38] sm:$0xff] %vm313_vm0, %v1948_v1 }
  0x83   : > { %338 = vst.msk [vmem:[#allocation3 + $0x40] sm:$0xff] %vm313_vm0, %v1948_v1 }
  0x84   : > { %339 = vst.msk [vmem:[#allocation3 + $0x48] sm:$0xff] %vm313_vm0, %v1948_v1 }
  0x85   : > { %340 = vst.msk [vmem:[#allocation3 + $0x50] sm:$0xff] %vm313_vm0, %v1948_v1 }
  0x86   : > { %341 = vst.msk [vmem:[#allocation3 + $0x58] sm:$0xff] %vm313_vm0, %v1948_v1 }
  0x87   : > { %342 = vst.msk [vmem:[#allocation3 + $0x60] sm:$0xff] %vm313_vm0, %v1948_v1 }
  0x88   : > { %343 = vst.msk [vmem:[#allocation3 + $0x68] sm:$0xff] %vm313_vm0, %v1948_v1 }
  0x89   : > { %344 = vst.msk [vmem:[#allocation3 + $0x70] sm:$0xff] %vm313_vm0, %v1948_v1 }
  0x8a   : > { %345 = vst.msk [vmem:[#allocation3 + $0x78] sm:$0xff] %vm313_vm0, %v1948_v1 }
  0x8b   : > { %346 = vst [vmem:[#allocation4 + $0x30] sm:$0xff] %v1948_v1 }
  0x8c   : > { %347 = vst [vmem:[#allocation4] sm:$0xff] %v1948_v1 }
  0x8d   : > { %348 = vst [vmem:[#allocation4 + $0x58] sm:$0xff] %v1948_v1 }
  0x8e   : > { %349 = vst [vmem:[#allocation4 + $0x18] sm:$0xff] %v1948_v1 }
  0x8f   : > { %350 = vst [vmem:[#allocation4 + $0x50] sm:$0xff] %v1948_v1 }
  0x90   : > { %351 = vst [vmem:[#allocation4 + $0x68] sm:$0xff] %v1948_v1 }
  0x91   : > { %352 = vst [vmem:[#allocation4 + $0x8] sm:$0xff] %v1948_v1 }
  0x92   : > { %353 = vst [vmem:[#allocation4 + $0x48] sm:$0xff] %v1948_v1 }
  0x93   : > { %354 = vst [vmem:[#allocation4 + $0x40] sm:$0xff] %v1948_v1 }
  0x94   : > { %355 = vst [vmem:[#allocation4 + $0x20] sm:$0xff] %v1948_v1 }
  0x95   : > { %356 = vst [vmem:[#allocation4 + $0x10] sm:$0xff] %v1948_v1 }
  0x96   : > { %357 = vst [vmem:[#allocation4 + $0x38] sm:$0xff] %v1948_v1 }
  0x97   : > { %358 = vst [vmem:[#allocation4 + $0x60] sm:$0xff] %v1948_v1 }
  0x98   : > { %359 = vst [vmem:[#allocation4 + $0x70] sm:$0xff] %v1948_v1 }
  0x99   : > { %360 = vst [vmem:[#allocation4 + $0x78] sm:$0xff] %v1948_v1 }
  0x9a   : > { %361 = vst [vmem:[#allocation4 + $0x28] sm:$0xff] %v1948_v1 }
  0x9b PF: > { %v393_v2 = vld [vmem:[%s2204_s6 + $0x78] sm:$0xff]  ;;  %v392_v3 = vld [vmem:[%s2204_s6 + $0x70] sm:$0xff]  ;;  %v391_v4 = vld [vmem:[%s2204_s6 + $0x68] sm:$0xff]  ;;  %vm811_vm1 = vcmask 7168   ;;  %s2768_s2 = sld [smem:[#allocation18_spill]] }
  0x9c   : > { %410 = vmatpush.xpose.msra.mxu0 %v393_v2  ;;  %1409 = vmatpush.xpose.msra.mxu2 %v393_v2  ;;  %v390_v5 = vld [vmem:[%s2204_s6 + $0x60] sm:$0xff]  ;;  %v389_v6 = vld [vmem:[%s2204_s6 + $0x58] sm:$0xff]  ;;  %v388_v7 = vld [vmem:[%s2204_s6 + $0x50] sm:$0xff] }
  0x9d   : > { %1410 = vmatpush.xpose.msra.mxu3 %v393_v2  ;;  %v387_v8 = vld [vmem:[%s2204_s6 + $0x48] sm:$0xff]  ;;  %v386_v9 = vld [vmem:[%s2204_s6 + $0x40] sm:$0xff]  ;;  %v385_v10 = vld [vmem:[%s2204_s6 + $0x38] sm:$0xff]  ;;  %v1949_v2 = vmov 0  }
  0x9e   : > { %v384_v11 = vld [vmem:[%s2204_s6 + $0x30] sm:$0xff]  ;;  %v383_v12 = vld [vmem:[%s2204_s6 + $0x28] sm:$0xff]  ;;  %v382_v13 = vld [vmem:[%s2204_s6 + $0x20] sm:$0xff]  ;;  %1609 = vset.pattern.permute.xlu1 %v1949_v2  ;;  %1610 = vset.pattern.permute.xlu2 %v1949_v2 }
  0x9f   : > { %v381_v14 = vld [vmem:[%s2204_s6 + $0x18] sm:$0xff]  ;;  %v380_v15 = vld [vmem:[%s2204_s6 + $0x10] sm:$0xff]  ;;  %v379_v16 = vld [vmem:[%s2204_s6 + $0x8] sm:$0xff]  ;;  %1611 = vset.pattern.permute.xlu0 %v1949_v2 }
  0xa0   : > { %411 = vmatpush.xpose.msra.mxu0 %v392_v3  ;;  %1411 = vmatpush.xpose.msra.mxu2 %v392_v3  ;;  %v378_v17 = vld [vmem:[%s2204_s6] sm:$0xff]  ;;  %v367_v19 = vld [vmem:[%s2196_s10 + $0x28] sm:$0xff]  ;;  %v368_v21 = vld [vmem:[%s2196_s10 + $0x30] sm:$0xff] }
  0xa1   : > { %1412 = vmatpush.xpose.msra.mxu3 %v392_v3  ;;  %v362_v18 = vld [vmem:[%s2196_s10] sm:$0xff]  ;;  %v363_v22 = vld [vmem:[%s2196_s10 + $0x8] sm:$0xff]  ;;  %v369_v24 = vld [vmem:[%s2196_s10 + $0x38] sm:$0xff]  ;;  %p1402_p6 = scmp.ne.s32.totalorder %s2768_s2, 1 }
  0xa2   : > { %v374_v20 = vld [vmem:[%s2196_s10 + $0x60] sm:$0xff]  ;;  %v375_v23 = vld [vmem:[%s2196_s10 + $0x68] sm:$0xff]  ;;  %v364_v25 = vld [vmem:[%s2196_s10 + $0x10] sm:$0xff] }
  0xa3   : > { %v376_v26 = vld [vmem:[%s2196_s10 + $0x70] sm:$0xff]  ;;  %v370_v27 = vld [vmem:[%s2196_s10 + $0x40] sm:$0xff]  ;;  %v365_v28 = vld [vmem:[%s2196_s10 + $0x18] sm:$0xff] }
  0xa4   : > { %412 = vmatpush.xpose.msra.mxu0 %v391_v4  ;;  %1413 = vmatpush.xpose.msra.mxu2 %v391_v4  ;;  %v377_v29 = vld [vmem:[%s2196_s10 + $0x78] sm:$0xff]  ;;  %v371_v30 = vld [vmem:[%s2196_s10 + $0x48] sm:$0xff]  ;;  %v366_v31 = vld [vmem:[%s2196_s10 + $0x20] sm:$0xff] }
  0xa5   : > { %1414 = vmatpush.xpose.msra.mxu3 %v391_v4  ;;  %v372_v32 = vld [vmem:[%s2196_s10 + $0x50] sm:$0xff]  ;;  %v373_v33 = vld [vmem:[%s2196_s10 + $0x58] sm:$0xff]  ;;  %v2327_v3 = vld [vmem:[#allocation2] sm:$0xff] }
  0xa6   : > { %v2424_v2 = vld [vmem:[#allocation2 + $0x50] sm:$0xff] }
  0xa8   : > { %413 = vmatpush.xpose.msra.mxu0 %v390_v5  ;;  %1415 = vmatpush.xpose.msra.mxu2 %v390_v5 }
  0xa9   : > { %1416 = vmatpush.xpose.msra.mxu3 %v390_v5 }
  0xac   : > { %414 = vmatpush.xpose.msra.mxu0 %v389_v6  ;;  %1417 = vmatpush.xpose.msra.mxu2 %v389_v6 }
  0xad   : > { %1418 = vmatpush.xpose.msra.mxu3 %v389_v6  ;;  %v2335_v6 = vld [vmem:[#allocation2 + $0x28] sm:$0xff] }
  0xb0   : > { %415 = vmatpush.xpose.msra.mxu0 %v388_v7  ;;  %1419 = vmatpush.xpose.msra.mxu2 %v388_v7 }
  0xb1   : > { %1420 = vmatpush.xpose.msra.mxu3 %v388_v7  ;;  %v2337_v7 = vld [vmem:[#allocation2 + $0x60] sm:$0xff] }
  0xb4   : > { %416 = vmatpush.xpose.msra.mxu0 %v387_v8  ;;  %1421 = vmatpush.xpose.msra.mxu2 %v387_v8 }
  0xb5   : > { %1422 = vmatpush.xpose.msra.mxu3 %v387_v8 }
  0xb8   : > { %417 = vmatpush.xpose.msra.mxu0 %v386_v9  ;;  %1423 = vmatpush.xpose.msra.mxu2 %v386_v9 }
  0xb9   : > { %1424 = vmatpush.xpose.msra.mxu3 %v386_v9 }
  0xbc   : > { %418 = vmatpush.xpose.msra.mxu0 %v385_v10  ;;  %1425 = vmatpush.xpose.msra.mxu2 %v385_v10 }
  0xbd   : > { %1426 = vmatpush.xpose.msra.mxu3 %v385_v10 }
  0xc0   : > { %419 = vmatpush.xpose.msra.mxu0 %v384_v11  ;;  %1427 = vmatpush.xpose.msra.mxu2 %v384_v11 }
  0xc1   : > { %1428 = vmatpush.xpose.msra.mxu3 %v384_v11 }
  0xc4   : > { %420 = vmatpush.xpose.msra.mxu0 %v383_v12  ;;  %1429 = vmatpush.xpose.msra.mxu2 %v383_v12 }
  0xc5   : > { %1430 = vmatpush.xpose.msra.mxu3 %v383_v12 }
  0xc8   : > { %421 = vmatpush.xpose.msra.mxu0 %v382_v13  ;;  %1431 = vmatpush.xpose.msra.mxu2 %v382_v13 }
  0xc9   : > { %1432 = vmatpush.xpose.msra.mxu3 %v382_v13 }
  0xcc   : > { %422 = vmatpush.xpose.msra.mxu0 %v381_v14  ;;  %1433 = vmatpush.xpose.msra.mxu2 %v381_v14 }
  0xcd   : > { %1434 = vmatpush.xpose.msra.mxu3 %v381_v14  ;;  %v2353_v14 = vld [vmem:[#allocation2 + $0x68] sm:$0xff] }
  0xd0   : > { %423 = vmatpush.xpose.msra.mxu0 %v380_v15  ;;  %1435 = vmatpush.xpose.msra.mxu2 %v380_v15 }
  0xd1   : > { %1436 = vmatpush.xpose.msra.mxu3 %v380_v15  ;;  %v2355_v15 = vld [vmem:[#allocation2 + $0x8] sm:$0xff] }
  0xd4   : > { %424 = vmatpush.xpose.msra.mxu0 %v379_v16  ;;  %1437 = vmatpush.xpose.msra.mxu2 %v379_v16 }
  0xd5   : > { %1438 = vmatpush.xpose.msra.mxu3 %v379_v16 }
  0xd8   : > { %425 = vmatpush.xpose.msra.mxu0 %v378_v17  ;;  %1439 = vmatpush.xpose.msra.mxu2 %v378_v17 }
  0xd9   : > { %1440 = vmatpush.xpose.msra.mxu3 %v378_v17 }
  0xdb   : > { %426 = vmatmul.f32.vlgmr.msra.gmra.mxu0 %v362_v18  ;;  %441 = vmatmul.f32.vlgmr.msra.gmra.mxu2 %v367_v19 }
  0xdc   : > { %462 = vmatmul.f32.vlgmr.msra.gmra.mxu3 %v374_v20 }
  0xe3   : > { %444 = vmatmul.f32.gmra.mxu2 %v368_v21  ;;  %429 = vmatmul.f32.gmra.mxu0 %v363_v22  ;;  %v2370_v21 = vld [vmem:[#allocation2 + $0x70] sm:$0xff] }
  0xe4   : > { %465 = vmatmul.f32.gmra.mxu3 %v375_v23  ;;  %v2372_v22 = vld [vmem:[#allocation2 + $0x10] sm:$0xff] }
  0xe5   : > { %v2374_v23 = vld [vmem:[#allocation2 + $0x30] sm:$0xff] }
  0xeb   : > { %447 = vmatmul.f32.gmra.mxu2 %v369_v24  ;;  %432 = vmatmul.f32.gmra.mxu0 %v364_v25 }
  0xec   : > { %468 = vmatmul.f32.gmra.mxu3 %v376_v26 }
  0xf3   : > { %450 = vmatmul.f32.gmra.mxu2 %v370_v27  ;;  %435 = vmatmul.f32.gmra.mxu0 %v365_v28 }
  0xf4   : > { %471 = vmatmul.f32.gmra.mxu3 %v377_v29 }
  0xfb   : > { %453 = vmatmul.f32.gmra.mxu2 %v371_v30  ;;  %438 = vmatmul.f32.gmra.mxu0 %v366_v31  ;;  %v2391_v31 = vld [vmem:[#allocation2 + $0x40] sm:$0xff] }
 0x103   : > { %456 = vmatmul.f32.gmra.mxu2 %v372_v32  ;;  %v2393_v32 = vld [vmem:[#allocation2 + $0x38] sm:$0xff] }
 0x10b   : > { %459 = vmatmul.f32.gmra.mxu2 %v373_v33  ;;  %v2395_v33 = vld [vmem:[#allocation2 + $0x78] sm:$0xff] }
 0x158   : > { %v427_v34 = vpop.f32.mrf.mxu0 }
 0x159   : > { %v2279_v35 = vmul.f32 0.088388346, %v427_v34 }
 0x15b   : > { %507 = vmax.xlane.f32.xlu0 %v2279_v35 }
 0x15e   : > { %v442_v36 = vpop.f32.mrf.mxu2 }
 0x15f   : > { %v2282_v37 = vmul.f32 0.088388346, %v442_v36  ;;  %v463_v38 = vpop.f32.mrf.mxu3 }
 0x160   : > { %v430_v39 = vpop.f32.mrf.mxu0  ;;  %v2284_v40 = vmul.f32 0.088388346, %v463_v38 }
 0x161   : > { %517 = vmax.xlane.f32.xlu2 %v2282_v37  ;;  %v2290_v45 = vmul.f32 0.088388346, %v430_v39 }
 0x163   : > { %531 = vmax.xlane.f32.xlu0 %v2284_v40 }
 0x166   : > { %v445_v41 = vpop.f32.mrf.mxu2 }
 0x167   : > { %v466_v42 = vpop.f32.mrf.mxu3  ;;  %v2298_v50 = vmul.f32 0.088388346, %v445_v41 }
 0x168   : > { %v2288_v43 = vmul.f32 0.088388346, %v466_v42  ;;  %v433_v44 = vpop.f32.mrf.mxu0 }
 0x169   : > { %v2294_v46 = vmul.f32 0.088388346, %v433_v44 }
 0x16a   : > { %533 = vmax.xlane.f32.xlu1 %v2288_v43 }
 0x16b   : > { %509 = vmax.xlane.f32.xlu0 %v2290_v45 }
 0x16e   : > { %v448_v47 = vpop.f32.mrf.mxu2 }
 0x16f   : > { %v469_v48 = vpop.f32.mrf.mxu3  ;;  %v2303_v52 = vmul.f32 0.088388346, %v448_v47  ;;  %v494_v47 = vld [vmem:[#allocation2 + $0x18] sm:$0xff] }
 0x170   : > { %v2296_v49 = vmul.f32 0.088388346, %v469_v48  ;;  %v436_v51 = vpop.f32.mrf.mxu0  ;;  %v495_v48 = vld [vmem:[#allocation2 + $0x20] sm:$0xff] }
 0x171   : > { %v2312_v58 = vmul.f32 0.088388346, %v436_v51 }
 0x172   : > { %535 = vmax.xlane.f32.xlu2 %v2296_v49  ;;  %511 = vmax.xlane.f32.xlu1 %v2294_v46 }
 0x173   : > { %519 = vmax.xlane.f32.xlu0 %v2298_v50 }
 0x176   : > { %v451_v53 = vpop.f32.mrf.mxu2 }
 0x177   : > { %v2305_v54 = vmul.f32 0.088388346, %v451_v53  ;;  %v472_v55 = vpop.f32.mrf.mxu3 }
 0x178   : > { %v2307_v56 = vmul.f32 0.088388346, %v472_v55  ;;  %v439_v57 = vpop.f32.mrf.mxu0  ;;  %v2415_v55 = vld [vmem:[#allocation2 + $0x48] sm:$0xff] }
 0x179   : > { %v2314_v59 = vmul.f32 0.088388346, %v439_v57 }
 0x17a   : > { %523 = vmax.xlane.f32.xlu2 %v2305_v54  ;;  %521 = vmax.xlane.f32.xlu1 %v2303_v52 }
 0x17b   : > { %537 = vmax.xlane.f32.xlu0 %v2307_v56 }
 0x17e   : > { %v454_v60 = vpop.f32.mrf.mxu2 }
 0x17f   : > { %v2316_v61 = vmul.f32 0.088388346, %v454_v60 }
 0x182   : > { %513 = vmax.xlane.f32.xlu1 %v2312_v58  ;;  %515 = vmax.xlane.f32.xlu2 %v2314_v59 }
 0x183   : > { %525 = vmax.xlane.f32.xlu0 %v2316_v61 }
 0x186   : > { %v457_v62 = vpop.f32.mrf.mxu2 }
 0x187   : > { %v2321_v63 = vmul.f32 0.088388346, %v457_v62 }
 0x18a   : > { %527 = vmax.xlane.f32.xlu1 %v2321_v63 }
 0x18e   : > { %v460_v0 = vpop.f32.mrf.mxu2 }
 0x18f   : > { %v2324_v1 = vmul.f32 0.088388346, %v460_v0 }
 0x191   : > { %529 = vmax.xlane.f32.xlu2 %v2324_v1 }
 0x1ce   : > { %v508_v4 = vpop.xlane.xlu0 %507 }
 0x1cf   : > { %v2330_v5 = vmax.f32 %v2327_v3, %v508_v4 }
 0x1d1   : > { %1037 = vst.msk [vmem:[#allocation2] sm:$0xff] %vm811_vm1, %v2330_v5  ;;  %605 = vperm.xlu1 %1609, %v2330_v5  }
 0x1d4   : > { %v518_v8 = vpop.xlane.xlu2 %517 }
 0x1d5   : > { %v2340_v9 = vmax.f32 %v2335_v6, %v518_v8 }
 0x1d6   : > { %v532_v10 = vpop.xlane.xlu0 %531 }
 0x1d7   : > { %v2343_v11 = vmax.f32 %v2337_v7, %v532_v10  ;;  %v560_v12 = vsub.f32 %v2335_v6, %v2340_v9  ;;  %1042 = vst.msk [vmem:[#allocation2 + $0x28] sm:$0xff] %vm811_vm1, %v2340_v9  ;;  %v555_v10 = vsub.f32 %v2327_v3, %v2330_v5  ;;  %v409_v5 = vld [vmem:[%s2210_s27 + $0x78] sm:$0xff]  ;;  %v400_v6 = vld [vmem:[%s2210_s27 + $0x30] sm:$0xff] }
 0x1d8   : > { %1441 = vmatpush.msra.mxu1 %v409_v5  ;;  %940 = vmatpush.msrb.mxu0 %v409_v5 }
 0x1d9   : > { %v567_v13 = vsub.f32 %v2337_v7, %v2343_v11  ;;  %1049 = vst.msk [vmem:[#allocation2 + $0x60] sm:$0xff] %vm811_vm1, %v2343_v11  ;;  %1442 = vmatpush.msrb.mxu3 %v409_v5  ;;  %v401_v5 = vld [vmem:[%s2210_s27 + $0x38] sm:$0xff] }
 0x1da   : > { %v397_v7 = vld [vmem:[%s2210_s27 + $0x18] sm:$0xff] }
 0x1dd   : > { %v534_v16 = vpop.xlane.xlu1 %533 }
 0x1de   : > { %v2358_v17 = vmax.f32 %v2353_v14, %v534_v16  ;;  %v510_v18 = vpop.xlane.xlu0 %509  ;;  %v2436_v16 = vld [vmem:[#allocation2 + $0x58] sm:$0xff] }
 0x1df   : > { %v2361_v19 = vmax.f32 %v2355_v15, %v510_v18 }
 0x1e0   : > { %v568_v20 = vsub.f32 %v2353_v14, %v2358_v17  ;;  %1050 = vst.msk [vmem:[#allocation2 + $0x68] sm:$0xff] %vm811_vm1, %v2358_v17 }
 0x1e1   : > { %1038 = vst.msk [vmem:[#allocation2 + $0x8] sm:$0xff] %vm811_vm1, %v2361_v19  ;;  %610 = vperm.xlu1 %1609, %v2361_v19  }
 0x1e5   : > { %v536_v24 = vpop.xlane.xlu2 %535  ;;  %v512_v25 = vpop.xlane.xlu1 %511 }
 0x1e6   : > { %v2377_v26 = vmax.f32 %v2370_v21, %v536_v24  ;;  %v541_v27 = vmax.f32 %v2372_v22, %v512_v25  ;;  %v520_v28 = vpop.xlane.xlu0 %519  ;;  %v571_v24 = vmul.f32 1.442695, %v555_v10  ;;  %v404_v10 = vld [vmem:[%s2210_s27 + $0x50] sm:$0xff] }
 0x1e7   : > { %v2381_v29 = vmax.f32 %v2374_v23, %v520_v28 }
 0x1e8   : > { %v569_v30 = vsub.f32 %v2370_v21, %v2377_v26  ;;  %1051 = vst.msk [vmem:[#allocation2 + $0x70] sm:$0xff] %vm811_vm1, %v2377_v26  ;;  %615 = vperm.xlu2 %1610, %v541_v27   ;;  %v557_v28 = vsub.f32 %v2372_v22, %v541_v27  ;;  %1612 = vpow2.f32 %v571_v24 }
 0x1e9   : > { %1039 = vst.msk [vmem:[#allocation2 + $0x10] sm:$0xff] %vm811_vm1, %v541_v27  ;;  %635 = vperm.xlu1 %1609, %v2381_v29   ;;  %v561_v27 = vsub.f32 %v2374_v23, %v2381_v29 }
 0x1ea   : > { %1043 = vst.msk [vmem:[#allocation2 + $0x30] sm:$0xff] %vm811_vm1, %v2381_v29 }
 0x1ed   : > { %v524_v34 = vpop.xlane.xlu2 %523  ;;  %v522_v36 = vpop.xlane.xlu1 %521 }
 0x1ee   : > { %v2398_v38 = vmax.f32 %v2391_v31, %v524_v34  ;;  %v2401_v39 = vmax.f32 %v2393_v32, %v522_v36  ;;  %v538_v41 = vpop.xlane.xlu0 %537  ;;  %v575_v34 = vmul.f32 1.442695, %v557_v28 }
 0x1ef   : > { %v2404_v42 = vmax.f32 %v2395_v33, %v538_v41  ;;  %v2448_v41 = vpop.eup %1612 }
 0x1f0   : > { %1045 = vst.msk [vmem:[#allocation2 + $0x40] sm:$0xff] %vm811_vm1, %v2398_v38  ;;  %1614 = vpow2.f32 %v575_v34 }
 0x1f1   : > { %1044 = vst.msk [vmem:[#allocation2 + $0x38] sm:$0xff] %vm811_vm1, %v2401_v39  ;;  %645 = vperm.xlu1 %1609, %v2398_v38   ;;  %v570_v44 = vsub.f32 %v2395_v33, %v2404_v42 }
 0x1f2   : > { %1052 = vst.msk [vmem:[#allocation2 + $0x78] sm:$0xff] %vm811_vm1, %v2404_v42 }
 0x1f5   : > { %v514_v51 = vpop.xlane.xlu1 %513  ;;  %v516_v53 = vpop.xlane.xlu2 %515 }
 0x1f6   : > { %v542_v57 = vmax.f32 %v494_v47, %v514_v51  ;;  %v543_v60 = vmax.f32 %v495_v48, %v516_v53  ;;  %v526_v62 = vpop.xlane.xlu0 %525  ;;  %v407_v51 = vld [vmem:[%s2210_s27 + $0x68] sm:$0xff]  ;;  %v556_v53 = vsub.f32 %v2355_v15, %v2361_v19  ;;  %v2460_v23 = vpop.eup %1614  ;;  %v562_v15 = vsub.f32 %v2393_v32, %v2401_v39  ;;  %v402_v32 = vld [vmem:[%s2210_s27 + $0x40] sm:$0xff] }
 0x1f7   : > { %v2419_v0 = vmax.f32 %v2415_v55, %v526_v62  ;;  %v405_v62 = vld [vmem:[%s2210_s27 + $0x58] sm:$0xff] }
 0x1f8   : > { %1040 = vst.msk [vmem:[#allocation2 + $0x18] sm:$0xff] %vm811_vm1, %v542_v57  ;;  %620 = vperm.xlu0 %1611, %v542_v57   ;;  %625 = vperm.xlu2 %1610, %v543_v60   ;;  %v558_v3 = vsub.f32 %v494_v47, %v542_v57  ;;  %v559_v22 = vsub.f32 %v495_v48, %v543_v60  ;;  %v408_v47 = vld [vmem:[%s2210_s27 + $0x70] sm:$0xff]  ;;  %v406_v57 = vld [vmem:[%s2210_s27 + $0x60] sm:$0xff]  ;;  %v573_v29 = vmul.f32 1.442695, %v556_v53 }
 0x1f9   : > { %1041 = vst.msk [vmem:[#allocation2 + $0x20] sm:$0xff] %vm811_vm1, %v543_v60  ;;  %1443 = vmatpush.msra.mxu1 %v408_v47  ;;  %941 = vmatpush.msrb.mxu0 %v408_v47  ;;  %v583_v60 = vmul.f32 1.442695, %v561_v27  ;;  %v564_v19 = vsub.f32 %v2415_v55, %v2419_v0  ;;  %v585_v24 = vmul.f32 1.442695, %v562_v15  ;;  %v398_v27 = vld [vmem:[%s2210_s27 + $0x20] sm:$0xff] }
 0x1fa   : > { %1046 = vst.msk [vmem:[#allocation2 + $0x48] sm:$0xff] %vm811_vm1, %v2419_v0  ;;  %v577_v36 = vmul.f32 1.442695, %v558_v3  ;;  %v579_v48 = vmul.f32 1.442695, %v559_v22  ;;  %1444 = vmatpush.msrb.mxu3 %v408_v47  ;;  %v394_v53 = vld [vmem:[%s2210_s27] sm:$0xff] }
 0x1fb   : > { %1445 = vmatpush.msra.mxu1 %v407_v51  ;;  %942 = vmatpush.msrb.mxu0 %v407_v51  ;;  %v589_v28 = vmul.f32 1.442695, %v564_v19  ;;  %v581_v55 = vmul.f32 1.442695, %v560_v12 }
 0x1fc   : > { %1616 = vpow2.f32 %v577_v36  ;;  %1446 = vmatpush.msrb.mxu3 %v407_v51  ;;  %v395_v51 = vld [vmem:[%s2210_s27 + $0x8] sm:$0xff] }
 0x1fd   : > { %v528_v4 = vpop.xlane.xlu1 %527  ;;  %1447 = vmatpush.msra.mxu1 %v406_v57  ;;  %943 = vmatpush.msrb.mxu0 %v406_v57  ;;  %1618 = vpow2.f32 %v579_v48 }
 0x1fe   : > { %v2427_v8 = vmax.f32 %v2424_v2, %v528_v4  ;;  %1448 = vmatpush.msrb.mxu3 %v406_v57  ;;  %1620 = vpow2.f32 %v583_v60 }
 0x1ff   : > { %1449 = vmatpush.msra.mxu1 %v405_v62  ;;  %1622 = vpow2.f32 %v573_v29  ;;  %944 = vmatpush.msrb.mxu0 %v405_v62 }
 0x200   : > { %1047 = vst.msk [vmem:[#allocation2 + $0x50] sm:$0xff] %vm811_vm1, %v2427_v8  ;;  %650 = vperm.xlu0 %1611, %v2419_v0   ;;  %655 = vperm.xlu1 %1609, %v2427_v8   ;;  %v565_v3 = vsub.f32 %v2424_v2, %v2427_v8  ;;  %1624 = vpow2.f32 %v585_v24  ;;  %v399_v2 = vld [vmem:[%s2210_s27 + $0x28] sm:$0xff]  ;;  %v595_v8 = vmul.f32 1.442695, %v567_v13 }
 0x201   : > { %630 = vperm.xlu2 %1610, %v2340_v9   ;;  %1450 = vmatpush.msrb.mxu3 %v405_v62  ;;  %1626 = vpow2.f32 %v589_v28  ;;  %v563_v9 = vsub.f32 %v2391_v31, %v2398_v38 }
 0x202   : > { %v2463_v4 = vpop.eup %1616  ;;  %1451 = vmatpush.msra.mxu1 %v404_v10  ;;  %945 = vmatpush.msrb.mxu0 %v404_v10  ;;  %1628 = vpow2.f32 %v581_v55  ;;  %v591_v12 = vmul.f32 1.442695, %v565_v3 }
 0x203   : > { %1452 = vmatpush.msrb.mxu3 %v404_v10  ;;  %v587_v22 = vmul.f32 1.442695, %v563_v9 }
 0x204   : > { %v530_v18 = vpop.xlane.xlu2 %529  ;;  %1630 = vpow2.f32 %v591_v12 }
 0x205   : > { %v2439_v25 = vmax.f32 %v2436_v16, %v530_v18  ;;  %v403_v18 = vld [vmem:[%s2210_s27 + $0x48] sm:$0xff]  ;;  %1632 = vpow2.f32 %v595_v8 }
 0x206   : > { %1453 = vmatpush.msra.mxu1 %v403_v18  ;;  %946 = vmatpush.msrb.mxu0 %v403_v18  ;;  %1634 = vpow2.f32 %v587_v22 }
 0x207   : > { %1048 = vst.msk [vmem:[#allocation2 + $0x58] sm:$0xff] %vm811_vm1, %v2439_v25  ;;  %1454 = vmatpush.msrb.mxu3 %v403_v18  ;;  %v566_v47 = vsub.f32 %v2436_v16, %v2439_v25 }
 0x208   : > { %675 = vperm.xlu0 %1611, %v2377_v26   ;;  %680 = vperm.xlu1 %1609, %v2404_v42  }
 0x209   : > { %640 = vperm.xlu2 %1610, %v2401_v39   ;;  %v2475_v39 = vpop.eup %1618  ;;  %1455 = vmatpush.msra.mxu1 %v402_v32  ;;  %v593_v13 = vmul.f32 1.442695, %v566_v47 }
 0x20a   : > { %v2480_v0 = vpop.eup %1620  ;;  %947 = vmatpush.msrb.mxu0 %v402_v32  ;;  %1456 = vmatpush.msrb.mxu3 %v402_v32 }
 0x20b   : > { %v2485_v34 = vpop.eup %1622  ;;  %1457 = vmatpush.msra.mxu1 %v401_v5  ;;  %1636 = vpow2.f32 %v593_v13 }
 0x20c   : > { %948 = vmatpush.msrb.mxu0 %v401_v5  ;;  %1458 = vmatpush.msrb.mxu3 %v401_v5  ;;  %v2497_v36 = vpop.eup %1624 }
 0x20d   : > { %1459 = vmatpush.msra.mxu1 %v400_v6  ;;  %v2500_v31 = vpop.eup %1626 }
 0x20e   : > { %949 = vmatpush.msrb.mxu0 %v400_v6  ;;  %1460 = vmatpush.msrb.mxu3 %v400_v6  ;;  %v2502_v38 = vpop.eup %1628 }
 0x20f   : > { %1461 = vmatpush.msra.mxu1 %v399_v2  ;;  %v2512_v16 = vpop.eup %1630 }
 0x210   : > { %665 = vperm.xlu0 %1611, %v2343_v11   ;;  %846 = vperm.xlu1 %1609, %v2448_v41   ;;  %v396_v11 = vld [vmem:[%s2210_s27 + $0x10] sm:$0xff] }
 0x211   : > { %670 = vperm.xlu2 %1610, %v2358_v17   ;;  %950 = vmatpush.msrb.mxu0 %v399_v2 }
 0x212   : > { %1463 = vmatpush.msra.mxu1 %v398_v27  ;;  %1462 = vmatpush.msrb.mxu3 %v399_v2 }
 0x213   : > { %951 = vmatpush.msrb.mxu0 %v398_v27 }
 0x214   : > { %1465 = vmatpush.msra.mxu1 %v397_v7  ;;  %1464 = vmatpush.msrb.mxu3 %v398_v27 }
 0x215   : > { %952 = vmatpush.msrb.mxu0 %v397_v7 }
 0x216   : > { %1467 = vmatpush.msra.mxu1 %v396_v11  ;;  %1466 = vmatpush.msrb.mxu3 %v397_v7 }
 0x217   : > { %953 = vmatpush.msrb.mxu0 %v396_v11 }
 0x218   : > { %856 = vperm.xlu0 %1611, %v2460_v23   ;;  %861 = vperm.xlu1 %1609, %v2463_v4  }
 0x219   : > { %660 = vperm.xlu2 %1610, %v2439_v25   ;;  %v2514_v25 = vpop.eup %1632  ;;  %1469 = vmatpush.msra.mxu1 %v395_v51 }
 0x21a   : > { %v2517_v48 = vpop.eup %1634  ;;  %954 = vmatpush.msrb.mxu0 %v395_v51  ;;  %1468 = vmatpush.msrb.mxu3 %v396_v11 }
 0x21b   : > { %1471 = vmatpush.msra.mxu1 %v394_v53  ;;  %v2522_v57 = vpop.eup %1636 }
 0x21c   : > { %955 = vmatpush.msrb.mxu0 %v394_v53  ;;  %1470 = vmatpush.msrb.mxu3 %v395_v51 }
 0x21e   : > { %1472 = vmatpush.msrb.mxu3 %v394_v53 }
 0x220   : > { %876 = vperm.xlu1 %1609, %v2480_v0   ;;  %866 = vperm.xlu0 %1611, %v2475_v39  }
 0x221   : > { %851 = vperm.xlu2 %1610, %v2485_v34  }
 0x228   : > { %891 = vperm.xlu1 %1609, %v2500_v31   ;;  %881 = vperm.xlu0 %1611, %v2497_v36  }
 0x229   : > { %871 = vperm.xlu2 %1610, %v2502_v38  }
 0x230   : > { %906 = vperm.xlu1 %1609, %v2514_v25   ;;  %896 = vperm.xlu0 %1611, %v2512_v16  }
 0x231   : > { %886 = vperm.xlu2 %1610, %v2517_v48  }
 0x239   : > { %901 = vperm.xlu2 %1610, %v2522_v57  }
 0x242   : > { %v616_v60 = vpop.permute.xlu2 %615 }
 0x243   : > { %v685_v29 = vsub.f32 %v2294_v46, %v616_v60  ;;  %v606_v62 = vpop.permute.xlu1 %605 }
 0x244   : > { %v683_v15 = vsub.f32 %v2279_v35, %v606_v62 }
 0x245   : > { %v703_v19 = vmul.f32 1.442695, %v685_v29 }
 0x246   : > { %v699_v10 = vmul.f32 1.442695, %v683_v15 }
 0x247   : > { %1638 = vpow2.f32 %v703_v19 }
 0x248   : > { %1640 = vpow2.f32 %v699_v10 }
 0x24d   : > { %v2527_v18 = vpop.eup %1638 }
 0x24e   : > { %v1641_v24 = vpop.eup %1640  ;;  %962 = vmatmul.f32.vlgmr.msra.gmra.mxu1 %v2527_v18 }
 0x24f   : > { %956 = vmatmul.f32.vlgmr.msrb.gmra.mxu0 %v1641_v24 }
 0x252   : > { %v626_v32 = vpop.permute.xlu2 %625 }
 0x253   : > { %v611_v28 = vpop.permute.xlu1 %610 }
 0x254   : > { %v684_v55 = vsub.f32 %v2290_v45, %v611_v28 }
 0x256   : > { %v701_v3 = vmul.f32 1.442695, %v684_v55 }
 0x258   : > { %1642 = vpow2.f32 %v701_v3 }
 0x25b   : > { %v631_v46 = vpop.permute.xlu2 %630  ;;  %v636_v9 = vpop.permute.xlu1 %635 }
 0x25c   : > { %v688_v5 = vsub.f32 %v2282_v37, %v631_v46  ;;  %v687_v37 = vsub.f32 %v2314_v59, %v626_v32 }
 0x25e   : > { %v1643_v35 = vpop.eup %1642  ;;  %v709_v6 = vmul.f32 1.442695, %v688_v5  ;;  %v707_v53 = vmul.f32 1.442695, %v687_v37 }
 0x25f   : > { %765 = vadd.xlane.f32.xlu1 %v1643_v35  ;;  %959 = vmatmul.f32.gmra.mxu0 %v1643_v35 }
 0x260   : > { %1644 = vpow2.f32 %v709_v6 }
 0x262   : > { %763 = vadd.xlane.f32.xlu2 %v1641_v24 }
 0x263   : > { %v641_v12 = vpop.permute.xlu2 %640  ;;  %v646_v45 = vpop.permute.xlu1 %645 }
 0x264   : > { %v690_v13 = vsub.f32 %v2303_v52, %v641_v12  ;;  %v689_v52 = vsub.f32 %v2298_v50, %v636_v9  ;;  %v691_v50 = vsub.f32 %v2305_v54, %v646_v45 }
 0x266   : > { %v1645_v2 = vpop.eup %1644  ;;  %v713_v60 = vmul.f32 1.442695, %v690_v13  ;;  %v711_v55 = vmul.f32 1.442695, %v689_v52  ;;  %v597_v13 = vmul.f32 1.442695, %v568_v20 }
 0x267   : > { %v731_v52 = vld [vmem:[#allocation3] sm:$0xff] }
 0x26a   : > { %773 = vadd.xlane.f32.xlu2 %v1645_v2  ;;  %v621_v8 = vpop.permute.xlu0 %620 }
 0x26b   : > { %v686_v22 = vsub.f32 %v2312_v58, %v621_v8  ;;  %v671_v27 = vpop.permute.xlu2 %670 }
 0x26c   : > { %v696_v47 = vsub.f32 %v2288_v43, %v671_v27 }
 0x26d   : > { %v705_v7 = vmul.f32 1.442695, %v686_v22 }
 0x26e   : > { %v725_v11 = vmul.f32 1.442695, %v696_v47 }
 0x26f   : > { %1646 = vpow2.f32 %v705_v7  ;;  %v601_v7 = vmul.f32 1.442695, %v570_v44 }
 0x270   : > { %1648 = vpow2.f32 %v725_v11 }
 0x271   : > { %1650 = vpow2.f32 %v707_v53  ;;  %v830_v53 = vld [vmem:[#allocation4 + $0x58] sm:$0xff] }
 0x272   : > { %v651_v51 = vpop.permute.xlu0 %650  ;;  %v656_v29 = vpop.permute.xlu1 %655  ;;  %1652 = vpow2.f32 %v713_v60 }
 0x273   : > { %v693_v32 = vsub.f32 %v2321_v63, %v656_v29  ;;  %v715_v63 = vmul.f32 1.442695, %v691_v50  ;;  %v661_v9 = vpop.permute.xlu2 %660  ;;  %v692_v27 = vsub.f32 %v2316_v61, %v651_v51  ;;  %v599_v61 = vmul.f32 1.442695, %v569_v30  ;;  %v828_v29 = vld [vmem:[#allocation4 + $0x30] sm:$0xff] }
 0x274   : > { %v694_v22 = vsub.f32 %v2324_v1, %v661_v9 }
 0x275   : > { %v1647_v62 = vpop.eup %1646  ;;  %v719_v5 = vmul.f32 1.442695, %v693_v32  ;;  %v717_v45 = vmul.f32 1.442695, %v692_v27 }
 0x276   : > { %v1649_v15 = vpop.eup %1648  ;;  %965 = vmatmul.f32.gmra.mxu1 %v1647_v62  ;;  %v721_v54 = vmul.f32 1.442695, %v694_v22  ;;  %v831_v22 = vld [vmem:[#allocation4 + $0x18] sm:$0xff] }
 0x277   : > { %789 = vadd.xlane.f32.xlu1 %v1649_v15  ;;  %995 = vmatmul.f32.vlgmr.msrb.gmra.mxu3 %v1649_v15  ;;  %v1651_v19 = vpop.eup %1650 }
 0x278   : > { %v1653_v10 = vpop.eup %1652 }
 0x27a   : > { %v676_v43 = vpop.permute.xlu0 %675  ;;  %v681_v24 = vpop.permute.xlu1 %680 }
 0x27b   : > { %v697_v58 = vsub.f32 %v2296_v49, %v676_v43  ;;  %v698_v28 = vsub.f32 %v2307_v56, %v681_v24  ;;  %v852_v42 = vpop.permute.xlu2 %851 }
 0x27d   : > { %v727_v59 = vmul.f32 1.442695, %v697_v58  ;;  %v729_v49 = vmul.f32 1.442695, %v698_v28  ;;  %v747_v28 = vmul.f32 %v2448_v41, %v731_v52  ;;  %v744_v41 = vld [vmem:[#allocation3 + $0x68] sm:$0xff] }
 0x27e   : > { %968 = vmatmul.f32.gmra.mxu1 %v1651_v19 }
 0x27f   : > { %1654 = vpow2.f32 %v727_v59  ;;  %777 = vadd.xlane.f32.xlu1 %v1653_v10  ;;  %v732_v59 = vld [vmem:[#allocation3 + $0x8] sm:$0xff] }
 0x280   : > { %1656 = vpow2.f32 %v711_v55 }
 0x282   : > { %v666_v3 = vpop.permute.xlu0 %665  ;;  %v847_v1 = vpop.permute.xlu1 %846 }
 0x283   : > { %v695_v46 = vsub.f32 %v2284_v40, %v666_v3  ;;  %v2562_v51 = vpop.permute.xlu2 %871  ;;  %v924_v43 = vmul.f32 %v847_v1, %v828_v29  ;;  %v745_v1 = vld [vmem:[#allocation3 + $0x70] sm:$0xff] }
 0x285   : > { %v1655_v35 = vpop.eup %1654  ;;  %v723_v6 = vmul.f32 1.442695, %v695_v46  ;;  %v829_v46 = vld [vmem:[#allocation4] sm:$0xff] }
 0x286   : > { %791 = vadd.xlane.f32.xlu2 %v1655_v35  ;;  %971 = vmatmul.f32.gmra.mxu1 %v1645_v2  ;;  %v1657_v56 = vpop.eup %1656 }
 0x287   : > { %1658 = vpow2.f32 %v723_v6  ;;  %771 = vadd.xlane.f32.xlu1 %v1651_v19  ;;  %998 = vmatmul.f32.gmra.mxu3 %v1655_v35  ;;  %v925_v35 = vmul.f32 %v852_v42, %v829_v46 }
 0x288   : > { %1660 = vpow2.f32 %v719_v5  ;;  %v736_v5 = vld [vmem:[#allocation3 + $0x28] sm:$0xff] }
 0x289   : > { %1662 = vpow2.f32 %v729_v49  ;;  %v752_v49 = vmul.f32 %v2502_v38, %v736_v5 }
 0x28a   : > { %1664 = vpow2.f32 %v715_v63  ;;  %v862_v33 = vpop.permute.xlu1 %861  ;;  %v857_v60 = vpop.permute.xlu0 %856 }
 0x28b   : > { %1666 = vpow2.f32 %v721_v54  ;;  %v2566_v30 = vpop.permute.xlu2 %886 }
 0x28c   : > { %1668 = vpow2.f32 %v717_v45 }
 0x28d   : > { %v1659_v12 = vpop.eup %1658  ;;  %1670 = vpow2.f32 %v601_v7 }
 0x28e   : > { %v1661_v8 = vpop.eup %1660  ;;  %787 = vadd.xlane.f32.xlu0 %v1659_v12  ;;  %769 = vadd.xlane.f32.xlu2 %v1647_v62  ;;  %1672 = vpow2.f32 %v599_v61  ;;  %v926_v62 = vmul.f32 %v857_v60, %v830_v53  ;;  %v832_v61 = vld [vmem:[#allocation4 + $0x50] sm:$0xff] }
 0x28f   : > { %v1663_v40 = vpop.eup %1662  ;;  %974 = vmatmul.f32.gmra.mxu1 %v1657_v56  ;;  %783 = vadd.xlane.f32.xlu1 %v1661_v8  ;;  %1674 = vpow2.f32 %v597_v13 }
 0x290   : > { %1001 = vmatmul.f32.gmra.mxu3 %v1663_v40  ;;  %v1665_v2 = vpop.eup %1664 }
 0x291   : > { %v1667_v47 = vpop.eup %1666 }
 0x292   : > { %v1669_v11 = vpop.eup %1668 }
 0x293   : > { %v2548_v37 = vpop.eup %1670  ;;  %v2570_v58 = vpop.permute.xlu2 %901 }
 0x294   : > { %v2554_v44 = vpop.eup %1672 }
 0x295   : > { %v1675_v26 = vpop.eup %1674  ;;  %v761_v42 = vmul.f32 %v2554_v44, %v745_v1  ;;  %v746_v1 = vld [vmem:[#allocation3 + $0x78] sm:$0xff] }
 0x296   : > { %775 = vadd.xlane.f32.xlu0 %v1657_v56  ;;  %779 = vadd.xlane.f32.xlu2 %v1665_v2  ;;  %v867_v56 = vpop.permute.xlu0 %866  ;;  %v760_v9 = vmul.f32 %v1675_v26, %v744_v41 }
 0x297   : > { %977 = vmatmul.f32.gmra.mxu1 %v1653_v10  ;;  %v748_v10 = vmul.f32 %v2485_v34, %v732_v59  ;;  %v928_v60 = vmul.f32 %v867_v56, %v832_v61  ;;  %v836_v61 = vld [vmem:[#allocation4 + $0x40] sm:$0xff] }
 0x29e   : > { %767 = vadd.xlane.f32.xlu0 %v2527_v18  ;;  %785 = vadd.xlane.f32.xlu2 %v1667_v47  ;;  %v2556_v18 = vpop.permute.xlu1 %876  ;;  %v2579_v54 = vpop.permute.xlu0 %881 }
 0x29f   : > { %980 = vmatmul.f32.gmra.mxu1 %v1665_v2  ;;  %v927_v2 = vmul.f32 %v862_v33, %v831_v22 }
 0x2a6   : > { %793 = vadd.xlane.f32.xlu0 %v1663_v40  ;;  %v2564_v21 = vpop.permute.xlu1 %891  ;;  %v738_v40 = vld [vmem:[#allocation3 + $0x38] sm:$0xff]  ;;  %v2584_v13 = vpop.permute.xlu0 %896 }
 0x2a7   : > { %983 = vmatmul.f32.gmra.mxu1 %v1669_v11  ;;  %v754_v38 = vmul.f32 %v2497_v36, %v738_v40 }
 0x2a8   : > { %921 = vperm.xlu1 %1609, %v2548_v37  }
 0x2ae   : > { %781 = vadd.xlane.f32.xlu0 %v1669_v11  ;;  %v2568_v15 = vpop.permute.xlu1 %906  ;;  %v735_v11 = vld [vmem:[#allocation3 + $0x20] sm:$0xff] }
 0x2af   : > { %986 = vmatmul.f32.gmra.mxu1 %v1661_v8 }
 0x2b6   : > { %916 = vperm.xlu2 %1610, %v2554_v44   ;;  %v833_v44 = vld [vmem:[#allocation4 + $0x68] sm:$0xff] }
 0x2b7   : > { %989 = vmatmul.f32.gmra.mxu1 %v1667_v47 }
 0x2bf   : > { %992 = vmatmul.f32.gmra.mxu1 %v1659_v12 }
 0x2c2   : > { %911 = vperm.xlu0 %1611, %v1675_v26   ;;  %v751_v26 = vmul.f32 %v2475_v39, %v735_v11  ;;  %v842_v11 = vld [vmem:[#allocation4 + $0x78] sm:$0xff] }
 0x2cb   : > { %v963_v14 = vpop.f32.mrf.mxu1 }
 0x2cc   : > { %v1007_v17 = vadd.f32 %v963_v14, %v926_v62  ;;  %v957_v20 = vpop.f32.mrf.mxu0  ;;  %v743_v14 = vld [vmem:[#allocation3 + $0x60] sm:$0xff] }
 0x2cd   : > { %v1005_v19 = vadd.f32 %v957_v20, %v924_v43  ;;  %v741_v20 = vld [vmem:[#allocation3 + $0x50] sm:$0xff] }
 0x2ce   : > { %1023 = vst [vmem:[#allocation4 + $0x58] sm:$0xff] %v1007_v17  ;;  %v734_v17 = vld [vmem:[#allocation3 + $0x18] sm:$0xff] }
 0x2cf   : > { %1021 = vst [vmem:[#allocation4 + $0x30] sm:$0xff] %v1005_v19  ;;  %v759_v19 = vmul.f32 %v2514_v25, %v743_v14  ;;  %v750_v39 = vmul.f32 %v2463_v4, %v734_v17  ;;  %v739_v25 = vld [vmem:[#allocation3 + $0x40] sm:$0xff]  ;;  %v834_v4 = vld [vmem:[#allocation4 + $0x8] sm:$0xff] }
 0x2d0   : > { %v930_v56 = vmul.f32 %v2556_v18, %v834_v4  ;;  %v840_v4 = vld [vmem:[#allocation4 + $0x60] sm:$0xff] }
 0x2d2   : > { %v766_v24 = vpop.xlane.xlu1 %765 }
 0x2d3   : > { %v796_v32 = vadd.f32 %v766_v24, %v748_v10  ;;  %v757_v10 = vmul.f32 %v2512_v16, %v741_v20  ;;  %v929_v24 = vmul.f32 %v2562_v51, %v833_v44  ;;  %v755_v51 = vmul.f32 %v2517_v48, %v739_v25  ;;  %v740_v20 = vld [vmem:[#allocation3 + $0x48] sm:$0xff] }
 0x2d4   : > { %v756_v44 = vmul.f32 %v2500_v31, %v740_v20 }
 0x2d5   : > { %813 = vst.msk [vmem:[#allocation3 + $0x8] sm:$0xff] %vm811_vm1, %v796_v32  ;;  %v764_v55 = vpop.xlane.xlu2 %763 }
 0x2d6   : > { %v795_v3 = vadd.f32 %v764_v55, %v747_v28 }
 0x2d8   : > { %812 = vst.msk [vmem:[#allocation3] sm:$0xff] %vm811_vm1, %v795_v3 }
 0x2dc   : > { %v960_v6 = vpop.f32.mrf.mxu0 }
 0x2dd   : > { %v774_v50 = vpop.xlane.xlu2 %773  ;;  %v1006_v63 = vadd.f32 %v960_v6, %v925_v35  ;;  %v737_v35 = vld [vmem:[#allocation3 + $0x30] sm:$0xff] }
 0x2de   : > { %v800_v34 = vadd.f32 %v774_v50, %v752_v49  ;;  %v753_v16 = vmul.f32 %v2480_v0, %v737_v35  ;;  %v835_v0 = vld [vmem:[#allocation4 + $0x48] sm:$0xff] }
 0x2df   : > { %1022 = vst [vmem:[#allocation4] sm:$0xff] %v1006_v63  ;;  %v931_v18 = vmul.f32 %v2579_v54, %v835_v0  ;;  %v932_v54 = vmul.f32 %v2566_v30, %v836_v61 }
 0x2e0   : > { %817 = vst.msk [vmem:[#allocation3 + $0x28] sm:$0xff] %vm811_vm1, %v800_v34 }
 0x2ea   : > { %v790_v12 = vpop.xlane.xlu1 %789 }
 0x2eb   : > { %v808_v8 = vadd.f32 %v790_v12, %v760_v9  ;;  %v733_v12 = vld [vmem:[#allocation3 + $0x10] sm:$0xff] }
 0x2ec   : > { %v749_v48 = vmul.f32 %v2460_v23, %v733_v12  ;;  %v762_v23 = vmul.f32 %v2548_v37, %v746_v1  ;;  %v837_v37 = vld [vmem:[#allocation4 + $0x20] sm:$0xff] }
 0x2ed   : > { %825 = vst.msk [vmem:[#allocation3 + $0x68] sm:$0xff] %vm811_vm1, %v808_v8  ;;  %v742_v8 = vld [vmem:[#allocation3 + $0x58] sm:$0xff] }
 0x2ee   : > { %v758_v40 = vmul.f32 %v2522_v57, %v742_v8  ;;  %v843_v57 = vld [vmem:[#allocation4 + $0x28] sm:$0xff] }
 0x2f2   : > { %v778_v27 = vpop.xlane.xlu1 %777 }
 0x2f3   : > { %v802_v45 = vadd.f32 %v778_v27, %v754_v38  ;;  %v966_v47 = vpop.f32.mrf.mxu1 }
 0x2f4   : > { %v1008_v7 = vadd.f32 %v966_v47, %v927_v2 }
 0x2f5   : > { %819 = vst.msk [vmem:[#allocation3 + $0x38] sm:$0xff] %vm811_vm1, %v802_v45 }
 0x2f6   : > { %1024 = vst [vmem:[#allocation4 + $0x18] sm:$0xff] %v1008_v7 }
 0x2f9   : > { %v792_v53 = vpop.xlane.xlu2 %791 }
 0x2fa   : > { %v772_v36 = vpop.xlane.xlu1 %771  ;;  %v809_v33 = vadd.f32 %v792_v53, %v761_v42  ;;  %v2598_v50 = vpop.f32.mrf.mxu3 }
 0x2fb   : > { %v799_v29 = vadd.f32 %v772_v36, %v751_v26  ;;  %v969_v62 = vpop.f32.mrf.mxu1 }
 0x2fc   : > { %826 = vst.msk [vmem:[#allocation3 + $0x70] sm:$0xff] %vm811_vm1, %v809_v33  ;;  %v1009_v43 = vadd.f32 %v969_v62, %v928_v60 }
 0x2fd   : > { %816 = vst.msk [vmem:[#allocation3 + $0x20] sm:$0xff] %vm811_vm1, %v799_v29 }
 0x2fe   : > { %1025 = vst [vmem:[#allocation4 + $0x50] sm:$0xff] %v1009_v43 }
 0x301   : > { %v788_v59 = vpop.xlane.xlu0 %787  ;;  %v770_v52 = vpop.xlane.xlu2 %769 }
 0x302   : > { %v807_v32 = vadd.f32 %v788_v59, %v759_v19  ;;  %v784_v28 = vpop.xlane.xlu1 %783  ;;  %v798_v55 = vadd.f32 %v770_v52, %v750_v39  ;;  %v933_v59 = vmul.f32 %v2564_v21, %v837_v37  ;;  %v838_v52 = vld [vmem:[#allocation4 + $0x10] sm:$0xff] }
 0x303   : > { %v805_v3 = vadd.f32 %v784_v28, %v757_v10  ;;  %v972_v46 = vpop.f32.mrf.mxu1 }
 0x304   : > { %824 = vst.msk [vmem:[#allocation3 + $0x60] sm:$0xff] %vm811_vm1, %v807_v32  ;;  %v1010_v5 = vadd.f32 %v972_v46, %v929_v24  ;;  %v934_v24 = vmul.f32 %v2584_v13, %v838_v52 }
 0x305   : > { %822 = vst.msk [vmem:[#allocation3 + $0x50] sm:$0xff] %vm811_vm1, %v805_v3  ;;  %v841_v3 = vld [vmem:[#allocation4 + $0x70] sm:$0xff] }
 0x306   : > { %815 = vst.msk [vmem:[#allocation3 + $0x18] sm:$0xff] %vm811_vm1, %v798_v55  ;;  %v839_v55 = vld [vmem:[#allocation4 + $0x38] sm:$0xff] }
 0x307   : > { %1026 = vst [vmem:[#allocation4 + $0x68] sm:$0xff] %v1010_v5  ;;  %v935_v46 = vmul.f32 %v2570_v58, %v839_v55 }
 0x309   : > { %v776_v49 = vpop.xlane.xlu0 %775  ;;  %v780_v6 = vpop.xlane.xlu2 %779 }
 0x30a   : > { %v801_v63 = vadd.f32 %v776_v49, %v753_v16  ;;  %v803_v34 = vadd.f32 %v780_v6, %v755_v51  ;;  %v999_v2 = vpop.f32.mrf.mxu3  ;;  %v936_v16 = vmul.f32 %v2568_v15, %v840_v4 }
 0x30c   : > { %818 = vst.msk [vmem:[#allocation3 + $0x30] sm:$0xff] %vm811_vm1, %v801_v63  ;;  %v975_v41 = vpop.f32.mrf.mxu1 }
 0x30d   : > { %820 = vst.msk [vmem:[#allocation3 + $0x40] sm:$0xff] %vm811_vm1, %v803_v34  ;;  %v1011_v9 = vadd.f32 %v975_v41, %v930_v56 }
 0x30f   : > { %1027 = vst [vmem:[#allocation4 + $0x8] sm:$0xff] %v1011_v9 }
 0x311   : > { %v768_v22 = vpop.xlane.xlu0 %767  ;;  %v786_v38 = vpop.xlane.xlu2 %785 }
 0x312   : > { %v797_v27 = vadd.f32 %v768_v22, %v749_v48  ;;  %v806_v45 = vadd.f32 %v786_v38, %v758_v40 }
 0x313   : > { %v1002_v29 = vpop.f32.mrf.mxu3 }
 0x314   : > { %814 = vst.msk [vmem:[#allocation3 + $0x10] sm:$0xff] %vm811_vm1, %v797_v27  ;;  %v978_v47 = vpop.f32.mrf.mxu1 }
 0x315   : > { %823 = vst.msk [vmem:[#allocation3 + $0x58] sm:$0xff] %vm811_vm1, %v806_v45  ;;  %v1012_v7 = vadd.f32 %v978_v47, %v931_v18 }
 0x317   : > { %1028 = vst [vmem:[#allocation4 + $0x48] sm:$0xff] %v1012_v7 }
 0x319   : > { %v794_v42 = vpop.xlane.xlu0 %793  ;;  %v917_v26 = vpop.permute.xlu2 %916 }
 0x31a   : > { %v810_v53 = vadd.f32 %v794_v42, %v762_v23  ;;  %v922_v60 = vpop.permute.xlu1 %921  ;;  %v938_v36 = vmul.f32 %v917_v26, %v842_v11 }
 0x31b   : > { %v939_v33 = vmul.f32 %v922_v60, %v843_v57 }
 0x31c   : > { %827 = vst.msk [vmem:[#allocation3 + $0x78] sm:$0xff] %vm811_vm1, %v810_v53  ;;  %v1019_v62 = vadd.f32 %v999_v2, %v938_v36  ;;  %v981_v43 = vpop.f32.mrf.mxu1 }
 0x31d   : > { %v1020_v14 = vadd.f32 %v1002_v29, %v939_v33  ;;  %v1013_v17 = vadd.f32 %v981_v43, %v932_v54 }
 0x31e   : > { %1035 = vst [vmem:[#allocation4 + $0x78] sm:$0xff] %v1019_v62 }
 0x31f   : > { %1036 = vst [vmem:[#allocation4 + $0x28] sm:$0xff] %v1020_v14 }
 0x320   : > { %1029 = vst [vmem:[#allocation4 + $0x40] sm:$0xff] %v1013_v17 }
 0x321   : > { %v782_v19 = vpop.xlane.xlu0 %781 }
 0x322   : > { %v804_v39 = vadd.f32 %v782_v19, %v756_v44 }
 0x324   : > { %821 = vst.msk [vmem:[#allocation3 + $0x48] sm:$0xff] %vm811_vm1, %v804_v39  ;;  %v984_v30 = vpop.f32.mrf.mxu1 }
 0x325   : > { %v1014_v10 = vadd.f32 %v984_v30, %v933_v59 }
 0x327   : > { %1030 = vst [vmem:[#allocation4 + $0x20] sm:$0xff] %v1014_v10 }
 0x32c   : > { %v987_v32 = vpop.f32.mrf.mxu1 }
 0x32d   : > { %v1015_v28 = vadd.f32 %v987_v32, %v934_v24 }
 0x32f   : > { %1031 = vst [vmem:[#allocation4 + $0x10] sm:$0xff] %v1015_v28 }
 0x334   : > { %v990_v31 = vpop.f32.mrf.mxu1  ;;  %v912_v5 = vpop.permute.xlu0 %911 }
 0x335   : > { %v1016_v35 = vadd.f32 %v990_v31, %v935_v46  ;;  %v937_v25 = vmul.f32 %v912_v5, %v841_v3 }
 0x337   : > { %1032 = vst [vmem:[#allocation4 + $0x38] sm:$0xff] %v1016_v35  ;;  %v1018_v21 = vadd.f32 %v2598_v50, %v937_v25 }
 0x339   : > { %1034 = vst [vmem:[#allocation4 + $0x70] sm:$0xff] %v1018_v21 }
 0x33b   : > { %1056 = sbr.rel (%p1402_p6) target bundleno = 1000 (0x3e8), region = 52 }
 0x33c   : > { %v993_v51 = vpop.f32.mrf.mxu1 }
 0x33d   : > { %v1017_v13 = vadd.f32 %v993_v51, %v936_v16 }
 0x33f   : > { %1033 = vst [vmem:[#allocation4 + $0x60] sm:$0xff] %v1017_v13 }
 0x340   : > { %v1061_v49 = vld [vmem:[#allocation3 + $0x20] sm:$0xff]  ;;  %v1059_v6 = vld [vmem:[#allocation3 + $0x10] sm:$0xff]  ;;  %v1950_v63 = vmov 0   ;;  %v1062_v50 = vld [vmem:[#allocation3 + $0x28] sm:$0xff] }
 0x341   : > { %v1057_v58 = vld [vmem:[#allocation3] sm:$0xff]  ;;  %1678 = vset.pattern.permute.xlu2 %v1950_v63  ;;  %1677 = vset.pattern.permute.xlu1 %v1950_v63  ;;  %1679 = vrcp.f32 %v1061_v49  ;;  %v1060_v34 = vld [vmem:[#allocation3 + $0x18] sm:$0xff]  ;;  %v1058_v56 = vld [vmem:[#allocation3 + $0x8] sm:$0xff] }
 0x342   : > { %1676 = vset.pattern.permute.xlu0 %v1950_v63  ;;  %1681 = vrcp.f32 %v1059_v6  ;;  %v1065_v12 = vld [vmem:[#allocation3 + $0x40] sm:$0xff]  ;;  %v1064_v0 = vld [vmem:[#allocation3 + $0x38] sm:$0xff]  ;;  %v1063_v40 = vld [vmem:[#allocation3 + $0x30] sm:$0xff] }
 0x343   : > { %1683 = vrcp.f32 %v1057_v58  ;;  %v1068_v38 = vld [vmem:[#allocation3 + $0x58] sm:$0xff]  ;;  %v1067_v27 = vld [vmem:[#allocation3 + $0x50] sm:$0xff]  ;;  %v1066_v18 = vld [vmem:[#allocation3 + $0x48] sm:$0xff] }
 0x344   : > { %1685 = vrcp.f32 %v1062_v50  ;;  %v1071_v7 = vld [vmem:[#allocation3 + $0x70] sm:$0xff]  ;;  %v1070_v11 = vld [vmem:[#allocation3 + $0x68] sm:$0xff]  ;;  %v1069_v23 = vld [vmem:[#allocation3 + $0x60] sm:$0xff] }
 0x345   : > { %1687 = vrcp.f32 %v1060_v34  ;;  %v1072_v53 = vld [vmem:[#allocation3 + $0x78] sm:$0xff]  ;;  %v1093_v54 = vld [vmem:[#allocation4 + $0x50] sm:$0xff]  ;;  %v1094_v62 = vld [vmem:[#allocation4 + $0x68] sm:$0xff] }
 0x346   : > { %1689 = vrcp.f32 %v1058_v56  ;;  %v1097_v17 = vld [vmem:[#allocation4 + $0x40] sm:$0xff]  ;;  %v1100_v44 = vld [vmem:[#allocation4 + $0x38] sm:$0xff]  ;;  %v1089_v59 = vld [vmem:[#allocation4 + $0x30] sm:$0xff] }
 0x347   : > { %v1680_v15 = vpop.eup %1679  ;;  %1691 = vrcp.f32 %v1065_v12  ;;  %v1091_v19 = vld [vmem:[#allocation4 + $0x58] sm:$0xff]  ;;  %v1090_v46 = vld [vmem:[#allocation4] sm:$0xff]  ;;  %v1096_v4 = vld [vmem:[#allocation4 + $0x48] sm:$0xff] }
 0x348   : > { %v1682_v41 = vpop.eup %1681  ;;  %1127 = vperm.xlu2 %1678, %v1680_v15   ;;  %1693 = vrcp.f32 %v1064_v0  ;;  %v1103_v28 = vld [vmem:[#allocation4 + $0x78] sm:$0xff]  ;;  %v1095_v16 = vld [vmem:[#allocation4 + $0x8] sm:$0xff]  ;;  %v1099_v58 = vld [vmem:[#allocation4 + $0x10] sm:$0xff] }
 0x349   : > { %v1684_v9 = vpop.eup %1683  ;;  %1117 = vperm.xlu1 %1677, %v1682_v41   ;;  %1695 = vrcp.f32 %v1063_v40  ;;  %v1092_v55 = vld [vmem:[#allocation4 + $0x18] sm:$0xff]  ;;  %v1098_v63 = vld [vmem:[#allocation4 + $0x20] sm:$0xff]  ;;  %v1102_v41 = vld [vmem:[#allocation4 + $0x70] sm:$0xff] }
 0x34a   : > { %1107 = vperm.xlu0 %1676, %v1684_v9   ;;  %v1686_v8 = vpop.eup %1685  ;;  %1697 = vrcp.f32 %v1068_v38  ;;  %v1101_v9 = vld [vmem:[#allocation4 + $0x60] sm:$0xff]  ;;  %v1104_v40 = vld [vmem:[#allocation4 + $0x28] sm:$0xff] }
 0x34b   : > { %v1688_v48 = vpop.eup %1687  ;;  %1699 = vrcp.f32 %v1067_v27 }
 0x34c   : > { %v1690_v22 = vpop.eup %1689  ;;  %1701 = vrcp.f32 %v1066_v18 }
 0x34d   : > { %v1692_v2 = vpop.eup %1691  ;;  %1703 = vrcp.f32 %v1071_v7 }
 0x34e   : > { %v1694_v45 = vpop.eup %1693  ;;  %1705 = vrcp.f32 %v1070_v11 }
 0x34f   : > { %v1696_v47 = vpop.eup %1695  ;;  %1707 = vrcp.f32 %v1069_v23 }
 0x350   : > { %1132 = vperm.xlu2 %1678, %v1686_v8   ;;  %v1698_v1 = vpop.eup %1697  ;;  %1709 = vrcp.f32 %v1072_v53 }
 0x351   : > { %1122 = vperm.xlu1 %1677, %v1688_v48   ;;  %v1700_v61 = vpop.eup %1699 }
 0x352   : > { %1112 = vperm.xlu0 %1676, %v1690_v22   ;;  %v1702_v57 = vpop.eup %1701 }
 0x353   : > { %v1704_v42 = vpop.eup %1703 }
 0x354   : > { %v1706_v26 = vpop.eup %1705 }
 0x355   : > { %v1708_v60 = vpop.eup %1707 }
 0x356   : > { %v1710_v36 = vpop.eup %1709 }
 0x358   : > { %1147 = vperm.xlu2 %1678, %v1692_v2  }
 0x359   : > { %1142 = vperm.xlu1 %1677, %v1694_v45  }
 0x35a   : > { %1137 = vperm.xlu0 %1676, %v1696_v47  }
 0x360   : > { %1162 = vperm.xlu2 %1678, %v1698_v1  }
 0x361   : > { %1157 = vperm.xlu1 %1677, %v1700_v61  }
 0x362   : > { %1152 = vperm.xlu0 %1676, %v1702_v57  }
 0x368   : > { %1177 = vperm.xlu2 %1678, %v1704_v42  }
 0x369   : > { %1172 = vperm.xlu1 %1677, %v1706_v26  }
 0x36a   : > { %1167 = vperm.xlu0 %1676, %v1708_v60  }
 0x372   : > { %1182 = vperm.xlu0 %1676, %v1710_v36  }
 0x3a2   : > { %v1128_v33 = vpop.permute.xlu2 %1127 }
 0x3a3   : > { %v1189_v29 = vmul.f32 %v1128_v33, %v1093_v54 }
 0x3a5   : > { %1205 = vst [vmem:[%s2212_s19 + $0x20] sm:$0xff] %v1189_v29 }
 0x3aa   : > { %v1133_v43 = vpop.permute.xlu2 %1132 }
 0x3ab   : > { %v1190_v14 = vmul.f32 %v1133_v43, %v1094_v62 }
 0x3ad   : > { %1206 = vst [vmem:[%s2212_s19 + $0x28] sm:$0xff] %v1190_v14 }
 0x3b2   : > { %v1148_v20 = vpop.permute.xlu2 %1147 }
 0x3b3   : > { %v1193_v37 = vmul.f32 %v1148_v20, %v1097_v17 }
 0x3b5   : > { %1209 = vst [vmem:[%s2212_s19 + $0x40] sm:$0xff] %v1193_v37 }
 0x3ba   : > { %v1163_v39 = vpop.permute.xlu2 %1162 }
 0x3bb   : > { %v1196_v30 = vmul.f32 %v1163_v39, %v1100_v44  ;;  %v1118_v10 = vpop.permute.xlu1 %1117 }
 0x3bc   : > { %v1187_v52 = vmul.f32 %v1118_v10, %v1091_v19  ;;  %v1108_v24 = vpop.permute.xlu0 %1107 }
 0x3bd   : > { %1212 = vst [vmem:[%s2212_s19 + $0x58] sm:$0xff] %v1196_v30  ;;  %v1185_v32 = vmul.f32 %v1108_v24, %v1089_v59 }
 0x3be   : > { %1203 = vst [vmem:[%s2212_s19 + $0x10] sm:$0xff] %v1187_v52 }
 0x3bf   : > { %1201 = vst [vmem:[%s2212_s19] sm:$0xff] %v1185_v32 }
 0x3c2   : > { %v1178_v3 = vpop.permute.xlu2 %1177 }
 0x3c3   : > { %v1199_v31 = vmul.f32 %v1178_v3, %v1103_v28  ;;  %v1123_v5 = vpop.permute.xlu1 %1122 }
 0x3c4   : > { %v1188_v35 = vmul.f32 %v1123_v5, %v1092_v55  ;;  %v1113_v25 = vpop.permute.xlu0 %1112 }
 0x3c5   : > { %1215 = vst [vmem:[%s2212_s19 + $0x70] sm:$0xff] %v1199_v31  ;;  %v1186_v21 = vmul.f32 %v1113_v25, %v1090_v46 }
 0x3c6   : > { %1204 = vst [vmem:[%s2212_s19 + $0x18] sm:$0xff] %v1188_v35 }
 0x3c7   : > { %1202 = vst [vmem:[%s2212_s19 + $0x8] sm:$0xff] %v1186_v21 }
 0x3cb   : > { %v1143_v51 = vpop.permute.xlu1 %1142 }
 0x3cc   : > { %v1192_v13 = vmul.f32 %v1143_v51, %v1096_v4  ;;  %v1138_v49 = vpop.permute.xlu0 %1137 }
 0x3cd   : > { %v1191_v6 = vmul.f32 %v1138_v49, %v1095_v16 }
 0x3ce   : > { %1208 = vst [vmem:[%s2212_s19 + $0x38] sm:$0xff] %v1192_v13 }
 0x3cf   : > { %1207 = vst [vmem:[%s2212_s19 + $0x30] sm:$0xff] %v1191_v6 }
 0x3d3   : > { %v1158_v50 = vpop.permute.xlu1 %1157 }
 0x3d4   : > { %v1195_v34 = vmul.f32 %v1158_v50, %v1099_v58  ;;  %v1153_v56 = vpop.permute.xlu0 %1152 }
 0x3d5   : > { %v1194_v15 = vmul.f32 %v1153_v56, %v1098_v63 }
 0x3d6   : > { %1211 = vst [vmem:[%s2212_s19 + $0x50] sm:$0xff] %v1195_v34 }
 0x3d7   : > { %1210 = vst [vmem:[%s2212_s19 + $0x48] sm:$0xff] %v1194_v15 }
 0x3db   : > { %v1173_v12 = vpop.permute.xlu1 %1172 }
 0x3dc   : > { %v1198_v8 = vmul.f32 %v1173_v12, %v1102_v41  ;;  %v1168_v0 = vpop.permute.xlu0 %1167 }
 0x3dd   : > { %v1197_v48 = vmul.f32 %v1168_v0, %v1101_v9 }
 0x3de   : > { %1214 = vst [vmem:[%s2212_s19 + $0x68] sm:$0xff] %v1198_v8 }
 0x3df   : > { %1213 = vst [vmem:[%s2212_s19 + $0x60] sm:$0xff] %v1197_v48 }
 0x3e4   : > { %v1183_v22 = vpop.permute.xlu0 %1182 }
 0x3e5   : > { %v1200_v38 = vmul.f32 %v1183_v22, %v1104_v40 }
 0x3e7   : > { %1216 = vst [vmem:[%s2212_s19 + $0x78] sm:$0xff] %v1200_v38 }
 0x3e8 PF: > { %s2769_s18 = sld [smem:[#allocation19_spill]]  ;;  %s1232_s16 = sshll.u32 %s2212_s19, 4  ;;  %s1233_s16 = int_to_ptr.vmem [resolvable:$true] %s1232_s16 }
 0x3e9   : > { %s2770_s4 = sld [smem:[#allocation20_spill]]  ;;  %s1218_s29 = scalar_lea.sflag [#allocation7], %s2192_s22 }
 0x3ea   : > { %s2772_s28 = sld [smem:[#allocation32_spill]] }
 0x3ee   : > { %s1404_s13 = sshll.u32 %s2769_s18, 4 }
 0x3ef   : > { %s1405_s1 = sshll.u32 %s2770_s4, 5 }
 0x3f0   : > { %s1229_s12 = sadd.s32 %s1405_s1, %s1404_s13  ;;  %s1821_s19 = scalar_lea.hbm %s2772_s28, 1024 }
 0x3f1   : > { %s1406_s5 = sshll.u32 %s1229_s12, 3 }
 0x3f2   : > { %s1231_s11 = scalar_lea.hbm %s2772_s28, %s1406_s5 }
 0x3f3   : > { %s1234_s9 = sshll.u32 %s1231_s11, 4  ;;  %s1235_s9 = int_to_ptr.hbm [resolvable:$true] %s1234_s9 }
 0x3f4   : > { %s1815_s3 = sshra.s32 %s1235_s9, 4  ;;  %s1816_s3 = int_to_ptr.hbm [resolvable:$true] %s1815_s3 }
 0x3f5   : > { %s1817_s8 = scalar_lea.hbm %s1816_s3, 128  ;;  %p1822_p5 = scmp.lt.s32.totalorder %s1816_s3, %s2772_s28 }
 0x3f6   : > { %p1818_p8 = scmp.ne.s32.totalorder %s1816_s3, %s1817_s8  ;;  %p1823_p9 = scmp.lt.s32.totalorder %s1821_s19, %s1817_s8 }
 0x3f8   : > { %p1819_p11 = pnand %p1818_p8, %p2141_p0  ;;  %p1824_p1 = por %p1823_p9, %p1822_p5 }
 0x3fa   : > { %p1820_p4 = pneg %p1819_p11 }
 0x3fc   : > { %p1825_p10 = pnand %p1824_p1, %p1820_p4 }
 0x3fe   : > { %1828 = shalt.err (!%p1825_p10)
}
 0x3ff   : > { %s1951_s22 = smov 128   ;;  %s1952_s18 = smov 8  }
 0x400   : > { %1479 = dma.vmem_to_hbm [thread:$0]  (%p2141_p0), %s1233_s16, 2048, %s1235_s9, %s1218_s29, %s1951_s22, %s1951_s22, %s1952_s18  }
 0x401 PF: > { %s2773_s4 = sld [smem:[#allocation16_spill]]  ;;  %p1496_p12 = scmp.ge.s32.totalorder %s1943_s24, 2 }
 0x403   : > { %p1492_p3 = pnand %p1496_p12, %p2152_p2 }
 0x405   : > { %p1493_p13 = pneg %p1492_p3 }
 0x407   : > { %s1249_s1 = sand.u32 1, %s2773_s4  }
 0x408   : > { %s1250_s12 = scalar_lea.sflag [#allocation7], %s1249_s1 }
 0x409   : > { %1890 = dma.done.wait (%p1493_p13), %s1250_s12, 2048  }
 0x40a   : > { %1892 = vsyncadd (%p1493_p13), %s1250_s12, 4294965248  ;;  %s22_s24 = sadd.s32 1, %s1943_s24   ;;  %s2776_s12 = sld [smem:[#allocation15_spill]] }
 0x40b   : > { %p2657_p7 = scmp.ge.s32.totalorder %s22_s24, 18   ;;  %s2777_s30 = sld [smem:[#allocation17_spill]] }
 0x40c   : > { %s2778_s10 = smov %s2164_s15  ;;  %s2779_s19 = sld [smem:[#allocation21_spill]] }
 0x40d   : > { %s2780_s22 = sld [smem:[#allocation26_spill]]  ;;  %s2782_s13 = smov %s1903_s14 }
 0x40e   : > { %s2781_s7 = sld [smem:[#allocation28_spill]]  ;;  %s2783_s14 = smov %s2169_s25 }
 0x40f   : > { %s2785_s16 = smov %s1915_s17  ;;  %s2786_s17 = smov %s2778_s10 }
 0x410   : > { %s2787_s18 = smov %s1931_s21  ;;  %s2788_s20 = smov %s1939_s23 }
 0x411   : > { %s2784_s15 = smov %s2777_s30  ;;  %s2789_s21 = smov %s2792_s26 }
 0x412   :  { %21 = sbr.rel (!%p2657_p7) target bundleno = 16 (0x10), region = 109 }
 0x414   : > { %s2790_s23 = smov %s2781_s7 }
 0x417   :  { %1256 = vsyncpa [#allocation6], 1 }
 0x418   :  { %1258 = vsyncpa [#allocation6 + $0x1], 1 }
 0x419   :  { %1259 = vsyncpa [#allocation9], 1 }
 0x41a   :  { %1261 = vsyncpa [#allocation9 + $0x1], 1 }
 0x41b   :  { %1262 = vsyncpa [#allocation7], 1 }
 0x41c   :  { %1264 = vsyncpa [#allocation7 + $0x1], 1 }

</bundles_post_ra>
